<compile_context>
chip_gen: v7x
topology: tpu7x:2x2x1
jax: 0.10.0
libtpu: 0.0.40
codegen_flags: <defaults>
</compile_context>

<pallas_src>
import functools

import jax
import jax.numpy as jnp
from jax.experimental import pallas as pl
from jax.experimental.pallas import tpu as pltpu


def _sepconv_kernel(x_ref, dw_ref, pw_ref, o_ref, xpad_ref, *,
                    TH, KH, KW, Cin, Cout, H, W, Wo, pad):
    # x_ref   : (1, Cin, H, W)    unpadded input for this batch (VMEM, auto-
    #                             pipelined; same block for every row tile of
    #                             a batch -> DMA'd once per batch).
    # dw_ref  : (Cin, KH*KW)      depthwise taps in SMEM (scalar reads).
    # pw_ref  : (Cin, Cout)       pointwise 1x1 weights in SMEM (scalar reads).
    # o_ref   : (1, Cout, TH, Wo) output row tile in VMEM.
    # xpad_ref: (Cin, Hp, Wp)     f32 zero-padded image scratch; persists
    #                             across the row-tile ("arbitrary") grid axis.
    r = pl.program_id(1)

    # Fused zero padding + one-time f32 up-cast, once per batch.
    @pl.when(r == 0)
    def _():
        xpad_ref[...] = jnp.zeros_like(xpad_ref)
        xpad_ref[:, pad:pad + H, pad:pad + W] = x_ref[0].astype(jnp.float32)

    row0 = pl.multiple_of(r * TH, TH)

    # Depthwise KxK conv (VPU): load each channel's row slab (incl. halo) once,
    # then take the KH*KW shifted windows of that in-register value and
    # accumulate -- 1 vld per channel instead of KH*KW, no repeated casts.
    dacc = []
    for ci in range(Cin):
        slab = xpad_ref[ci, pl.ds(row0, TH + KH - 1), :]   # (TH+KH-1, Wp) f32
        acc = None
        for kh in range(KH):
            for kw in range(KW):
                term = slab[kh:kh + TH, kw:kw + Wo] * dw_ref[ci, kh * KW + kw]
                acc = term if acc is None else acc + term
        dacc.append(acc)

    # Pointwise 1x1 conv (VPU): Cout scalar*plane MACs over Cin.  At these
    # channel counts this beats a <1%-utilized MXU contraction.
    # TODO(synk): for Cin >= ~32 and Cout >= ~64 (esp. on v5e) switch to a
    # (TH*Wo, Cin) @ (Cin, Cout) MXU matmul with VMEM-resident weights.
    # TODO(synk): if profiling shows store/VALU bound (larger H/W/C), present a
    # lane-dense (N, Ho, Cout*Wo) output slab instead of NCHW masked stores.
    for co in range(Cout):
        out = None
        for ci in range(Cin):
            term = dacc[ci] * pw_ref[ci, co]
            out = term if out is None else out + term
        o_ref[0, co] = out.astype(o_ref.dtype)


def _round_up(v, m):
    return -(-v // m) * m


def separable_conv2d(x_nchw, dw_weight, pw_weight, *, padding):
    """Forward pass of SeparableConv2d (stride=1, dilation=1, bias=False).

    x_nchw   : (N, Cin, H, W)
    dw_weight: (Cin, 1, KH, KW)   PyTorch depthwise (groups=Cin) layout
    pw_weight: (Cout, Cin, 1, 1)
    returns  : (N, Cout, Ho, Wo) in NCHW (matches PyTorch).
    """
    N, Cin, H, W = x_nchw.shape
    KH, KW = int(dw_weight.shape[2]), int(dw_weight.shape[3])
    Cout = int(pw_weight.shape[0])
    Hp, Wp = H + 2 * padding, W + 2 * padding
    Ho, Wo = Hp - KH + 1, Wp - KW + 1

    itemsize = jnp.dtype(x_nchw.dtype).itemsize
    sublane = max(8, 32 // itemsize)          # 8 for f32, 16 for bf16

    # Adaptive output-row tiling: use whole-height tiles unless the per-step
    # working set would exceed ~4 MiB; TH must divide Ho and be sublane
    # aligned (or equal Ho).  For N==1 force >=2 row tiles so both v7x
    # TensorCores get a grid step (for N>=2 the parallel batch axis covers it;
    # on v5e/v6e the extra split costs ~nothing).
    row_bytes = (Cin * _round_up(Wp, 128) + 2 * Cout * _round_up(Wo, 128)) * 4
    budget = 4 * 1024 * 1024
    cands = [t for t in range(Ho, 0, -1)
             if Ho % t == 0 and (t == Ho or t % sublane == 0)]
    TH = next((t for t in cands if t * row_bytes <= budget), cands[-1])
    if N == 1 and Ho // TH < 2:
        smaller = [t for t in cands if t < TH]
        if smaller:
            TH = smaller[0]
    R = Ho // TH

    # Tiny host-side weight re-layouts: depthwise taps as (Cin, KH*KW),
    # pointwise as (Cin, Cout); both consumed as SMEM scalars in the kernel.
    dw = dw_weight[:, 0, :, :].reshape(Cin, KH * KW).astype(jnp.float32)
    pw = jnp.transpose(pw_weight[:, :, 0, 0], (1, 0)).astype(jnp.float32)

    kernel = functools.partial(_sepconv_kernel, TH=TH, KH=KH, KW=KW,
                               Cin=Cin, Cout=Cout, H=H, W=W, Wo=Wo,
                               pad=padding)

    # Explicit VMEM budget: double-buffered input + output blocks plus the
    # padded f32 scratch, with (sublane,128) tile padding accounted for.
    est_bytes = (2 * Cin * _round_up(H, sublane) * _round_up(W, 128) * itemsize
                 + 2 * Cout * _round_up(TH, sublane) * _round_up(Wo, 128) * itemsize
                 + Cin * _round_up(Hp, 8) * _round_up(Wp, 128) * 4)
    vmem_limit = int(min(32 * 1024 * 1024, max(8 * 1024 * 1024, 2 * est_bytes)))

    out = pl.pallas_call(
        kernel,
        out_shape=jax.ShapeDtypeStruct((N, Cout, Ho, Wo), x_nchw.dtype),
        grid_spec=pltpu.PrefetchScalarGridSpec(
            num_scalar_prefetch=0,
            grid=(N, R),
            in_specs=[
                # Whole (unpadded) image per batch; block index constant over
                # the row axis -> fetched once per batch, double-buffered by
                # the auto-pipeline across batches.
                pl.BlockSpec((1, Cin, H, W), lambda b, r: (b, 0, 0, 0)),
                pl.BlockSpec(memory_space=pltpu.MemorySpace.SMEM),  # dw taps
                pl.BlockSpec(memory_space=pltpu.MemorySpace.SMEM),  # pw weights
            ],
            out_specs=pl.BlockSpec((1, Cout, TH, Wo),
                                   lambda b, r: (b, 0, r, 0)),
            scratch_shapes=[
                pltpu.VMEM((Cin, Hp, Wp), jnp.float32),   # padded f32 image
            ]),
        compiler_params=pltpu.CompilerParams(
            # Batch axis parallel (megacore sharding on v7x); row-tile axis
            # arbitrary so the padded scratch filled at r==0 stays valid for
            # the rest of the batch's row tiles.
            dimension_semantics=("parallel", "arbitrary"),
            vmem_limit_bytes=vmem_limit),
    )(x_nchw, dw, pw)
    return out


def _reference(x_nchw, dw_weight, pw_weight, *, padding):
    """Plain-JAX reference mirroring PyTorch Conv2d semantics."""
    dn = jax.lax.conv_dimension_numbers(x_nchw.shape, dw_weight.shape,
                                        ("NCHW", "OIHW", "NCHW"))
    depth = jax.lax.conv_general_dilated(
        x_nchw, dw_weight, window_strides=(1, 1),
        padding=[(padding, padding), (padding, padding)],
        dimension_numbers=dn, feature_group_count=x_nchw.shape[1])
    point = jax.lax.conv_general_dilated(
        depth, pw_weight, window_strides=(1, 1), padding=[(0, 0), (0, 0)],
        dimension_numbers=dn)
    return point


if __name__ == "__main__":
    # in_channels=4, out_channels=8, kernel_size=3, stride=1, padding=1,
    # dilation=1, bias=False.
    N, Cin, H, W = 2, 4, 16, 16
    Cout, K, PAD = 8, 3, 1

    key = jax.random.PRNGKey(0)
    kx, kdw, kpw = jax.random.split(key, 3)
    x = jax.random.normal(kx, (N, Cin, H, W), dtype=jnp.float32)
    dw_weight = jax.random.normal(kdw, (Cin, 1, K, K), dtype=jnp.float32) * 0.1
    pw_weight = jax.random.normal(kpw, (Cout, Cin, 1, 1), dtype=jnp.float32) * 0.1

    out = separable_conv2d(x, dw_weight, pw_weight, padding=PAD)
    out = jax.block_until_ready(out)

    ref = _reference(x, dw_weight, pw_weight, padding=PAD)
    assert out.shape == (N, Cout, H, W), out.shape
    assert jnp.allclose(out, ref, atol=1e-4, rtol=1e-4), "mismatch vs reference"

    print("KERNEL_OK")
</pallas_src>

<mosaic_0001>
module attributes {stable_mosaic.version = 11 : i64} {
  func.func @_sepconv_kernel(%arg0: i32, %arg1: i32, %arg2: memref<1x4x16x16xf32, #tpu.memory_space<vmem>>, %arg3: memref<4x9xf32, #tpu.memory_space<smem>>, %arg4: memref<4x8xf32, #tpu.memory_space<smem>>, %arg5: memref<1x8x16x16xf32, #tpu.memory_space<vmem>>, %arg6: memref<4x18x18xf32, #tpu.memory_space<vmem>>) attributes {dimension_semantics = [#tpu.dimension_semantics<parallel>, #tpu.dimension_semantics<arbitrary>], iteration_bounds = array<i64: 2, 1>, scalar_prefetch = 0 : i64, scratch_operands = 1 : i64, tpu.core_type = #tpu.core_type<tc>, window_params = [{transform_indices = @transform_0, window_bounds = array<i64: 1, 4, 16, 16>}, {transform_indices = @transform_1, window_bounds = array<i64: 4, 9>}, {transform_indices = @transform_2, window_bounds = array<i64: 4, 8>}, {transform_indices = @transform_3, window_bounds = array<i64: 1, 8, 16, 16>}]} {
    %c0_i32 = arith.constant 0 : i32
    %0 = arith.cmpi eq, %arg1, %c0_i32 : i32
    %1 = arith.extui %0 : i1 to i32
    %c0_i32_0 = arith.constant 0 : i32
    %2 = arith.cmpi ne, %1, %c0_i32_0 : i32
    scf.if %2 {
      %cst = arith.constant 0.000000e+00 : f32
      %337 = vector.broadcast %cst : f32 to vector<4x18x18xf32>
      %c0_168 = arith.constant 0 : index
      %c0_169 = arith.constant 0 : index
      %c0_170 = arith.constant 0 : index
      %338 = vector.load %arg6[%c0_168, %c0_169, %c0_170] : memref<4x18x18xf32, #tpu.memory_space<vmem>>, vector<4x18x18xf32>
      tpu.vector_store %arg6[%c0_168, %c0_169, %c0_170], %337 {strides = array<i32>} : memref<4x18x18xf32, #tpu.memory_space<vmem>>, vector<4x18x18xf32>,
      %c0_171 = arith.constant 0 : index
      %c0_172 = arith.constant 0 : index
      %c0_173 = arith.constant 0 : index
      %c0_174 = arith.constant 0 : index
      %339 = vector.load %arg2[%c0_171, %c0_172, %c0_173, %c0_174] : memref<1x4x16x16xf32, #tpu.memory_space<vmem>>, vector<1x4x16x16xf32>
      %340 = vector.shape_cast %339 : vector<1x4x16x16xf32> to vector<4x16x16xf32>
      %c0_175 = arith.constant 0 : index
      %c1_176 = arith.constant 1 : index
      %c1_177 = arith.constant 1 : index
      %341 = vector.load %arg6[%c0_175, %c1_176, %c1_177] : memref<4x18x18xf32, #tpu.memory_space<vmem>>, vector<4x16x16xf32>
      tpu.vector_store %arg6[%c0_175, %c1_176, %c1_177], %340 {strides = array<i32>} : memref<4x18x18xf32, #tpu.memory_space<vmem>>, vector<4x16x16xf32>,
    } else {
    }
    %c16_i32 = arith.constant 16 : i32
    %3 = arith.muli %arg1, %c16_i32 : i32
    %4 = tpu.assume_multiple %3, 16 : i32
    %c0 = arith.constant 0 : index
    %5 = arith.index_cast %4 : i32 to index
    %c0_1 = arith.constant 0 : index
    %6 = vector.load %arg6[%c0, %5, %c0_1] : memref<4x18x18xf32, #tpu.memory_space<vmem>>, vector<1x18x18xf32>
    %7 = vector.shape_cast %6 : vector<1x18x18xf32> to vector<18x18xf32>
    %8 = vector.extract_strided_slice %7 {offsets = [0, 0], sizes = [16, 16], strides = [1, 1]} : vector<18x18xf32> to vector<16x16xf32>
    %c0_2 = arith.constant 0 : index
    %c0_3 = arith.constant 0 : index
    %9 = memref.load %arg3[%c0_2, %c0_3] : memref<4x9xf32, #tpu.memory_space<smem>>
    %10 = vector.broadcast %9 : f32 to vector<16x16xf32>
    %11 = arith.mulf %8, %10 : vector<16x16xf32>
    %12 = vector.extract_strided_slice %7 {offsets = [0, 1], sizes = [16, 16], strides = [1, 1]} : vector<18x18xf32> to vector<16x16xf32>
    %c0_4 = arith.constant 0 : index
    %c1 = arith.constant 1 : index
    %13 = memref.load %arg3[%c0_4, %c1] : memref<4x9xf32, #tpu.memory_space<smem>>
    %14 = vector.broadcast %13 : f32 to vector<16x16xf32>
    %15 = arith.mulf %12, %14 : vector<16x16xf32>
    %16 = arith.addf %11, %15 : vector<16x16xf32>
    %17 = vector.extract_strided_slice %7 {offsets = [0, 2], sizes = [16, 16], strides = [1, 1]} : vector<18x18xf32> to vector<16x16xf32>
    %c0_5 = arith.constant 0 : index
    %c2 = arith.constant 2 : index
    %18 = memref.load %arg3[%c0_5, %c2] : memref<4x9xf32, #tpu.memory_space<smem>>
    %19 = vector.broadcast %18 : f32 to vector<16x16xf32>
    %20 = arith.mulf %17, %19 : vector<16x16xf32>
    %21 = arith.addf %16, %20 : vector<16x16xf32>
    %22 = vector.extract_strided_slice %7 {offsets = [1, 0], sizes = [16, 16], strides = [1, 1]} : vector<18x18xf32> to vector<16x16xf32>
    %c0_6 = arith.constant 0 : index
    %c3 = arith.constant 3 : index
    %23 = memref.load %arg3[%c0_6, %c3] : memref<4x9xf32, #tpu.memory_space<smem>>
    %24 = vector.broadcast %23 : f32 to vector<16x16xf32>
    %25 = arith.mulf %22, %24 : vector<16x16xf32>
    %26 = arith.addf %21, %25 : vector<16x16xf32>
    %27 = vector.extract_strided_slice %7 {offsets = [1, 1], sizes = [16, 16], strides = [1, 1]} : vector<18x18xf32> to vector<16x16xf32>
    %c0_7 = arith.constant 0 : index
    %c4 = arith.constant 4 : index
    %28 = memref.load %arg3[%c0_7, %c4] : memref<4x9xf32, #tpu.memory_space<smem>>
    %29 = vector.broadcast %28 : f32 to vector<16x16xf32>
    %30 = arith.mulf %27, %29 : vector<16x16xf32>
    %31 = arith.addf %26, %30 : vector<16x16xf32>
    %32 = vector.extract_strided_slice %7 {offsets = [1, 2], sizes = [16, 16], strides = [1, 1]} : vector<18x18xf32> to vector<16x16xf32>
    %c0_8 = arith.constant 0 : index
    %c5 = arith.constant 5 : index
    %33 = memref.load %arg3[%c0_8, %c5] : memref<4x9xf32, #tpu.memory_space<smem>>
    %34 = vector.broadcast %33 : f32 to vector<16x16xf32>
    %35 = arith.mulf %32, %34 : vector<16x16xf32>
    %36 = arith.addf %31, %35 : vector<16x16xf32>
    %37 = vector.extract_strided_slice %7 {offsets = [2, 0], sizes = [16, 16], strides = [1, 1]} : vector<18x18xf32> to vector<16x16xf32>
    %c0_9 = arith.constant 0 : index
    %c6 = arith.constant 6 : index
    %38 = memref.load %arg3[%c0_9, %c6] : memref<4x9xf32, #tpu.memory_space<smem>>
    %39 = vector.broadcast %38 : f32 to vector<16x16xf32>
    %40 = arith.mulf %37, %39 : vector<16x16xf32>
    %41 = arith.addf %36, %40 : vector<16x16xf32>
    %42 = vector.extract_strided_slice %7 {offsets = [2, 1], sizes = [16, 16], strides = [1, 1]} : vector<18x18xf32> to vector<16x16xf32>
    %c0_10 = arith.constant 0 : index
    %c7 = arith.constant 7 : index
    %43 = memref.load %arg3[%c0_10, %c7] : memref<4x9xf32, #tpu.memory_space<smem>>
    %44 = vector.broadcast %43 : f32 to vector<16x16xf32>
    %45 = arith.mulf %42, %44 : vector<16x16xf32>
    %46 = arith.addf %41, %45 : vector<16x16xf32>
    %47 = vector.extract_strided_slice %7 {offsets = [2, 2], sizes = [16, 16], strides = [1, 1]} : vector<18x18xf32> to vector<16x16xf32>
    %c0_11 = arith.constant 0 : index
    %c8 = arith.constant 8 : index
    %48 = memref.load %arg3[%c0_11, %c8] : memref<4x9xf32, #tpu.memory_space<smem>>
    %49 = vector.broadcast %48 : f32 to vector<16x16xf32>
    %50 = arith.mulf %47, %49 : vector<16x16xf32>
    %51 = arith.addf %46, %50 : vector<16x16xf32>
    %c1_12 = arith.constant 1 : index
    %52 = arith.index_cast %4 : i32 to index
    %c0_13 = arith.constant 0 : index
    %53 = vector.load %arg6[%c1_12, %52, %c0_13] : memref<4x18x18xf32, #tpu.memory_space<vmem>>, vector<1x18x18xf32>
    %54 = vector.shape_cast %53 : vector<1x18x18xf32> to vector<18x18xf32>
    %55 = vector.extract_strided_slice %54 {offsets = [0, 0], sizes = [16, 16], strides = [1, 1]} : vector<18x18xf32> to vector<16x16xf32>
    %c1_14 = arith.constant 1 : index
    %c0_15 = arith.constant 0 : index
    %56 = memref.load %arg3[%c1_14, %c0_15] : memref<4x9xf32, #tpu.memory_space<smem>>
    %57 = vector.broadcast %56 : f32 to vector<16x16xf32>
    %58 = arith.mulf %55, %57 : vector<16x16xf32>
    %59 = vector.extract_strided_slice %54 {offsets = [0, 1], sizes = [16, 16], strides = [1, 1]} : vector<18x18xf32> to vector<16x16xf32>
    %c1_16 = arith.constant 1 : index
    %c1_17 = arith.constant 1 : index
    %60 = memref.load %arg3[%c1_16, %c1_17] : memref<4x9xf32, #tpu.memory_space<smem>>
    %61 = vector.broadcast %60 : f32 to vector<16x16xf32>
    %62 = arith.mulf %59, %61 : vector<16x16xf32>
    %63 = arith.addf %58, %62 : vector<16x16xf32>
    %64 = vector.extract_strided_slice %54 {offsets = [0, 2], sizes = [16, 16], strides = [1, 1]} : vector<18x18xf32> to vector<16x16xf32>
    %c1_18 = arith.constant 1 : index
    %c2_19 = arith.constant 2 : index
    %65 = memref.load %arg3[%c1_18, %c2_19] : memref<4x9xf32, #tpu.memory_space<smem>>
    %66 = vector.broadcast %65 : f32 to vector<16x16xf32>
    %67 = arith.mulf %64, %66 : vector<16x16xf32>
    %68 = arith.addf %63, %67 : vector<16x16xf32>
    %69 = vector.extract_strided_slice %54 {offsets = [1, 0], sizes = [16, 16], strides = [1, 1]} : vector<18x18xf32> to vector<16x16xf32>
    %c1_20 = arith.constant 1 : index
    %c3_21 = arith.constant 3 : index
    %70 = memref.load %arg3[%c1_20, %c3_21] : memref<4x9xf32, #tpu.memory_space<smem>>
    %71 = vector.broadcast %70 : f32 to vector<16x16xf32>
    %72 = arith.mulf %69, %71 : vector<16x16xf32>
    %73 = arith.addf %68, %72 : vector<16x16xf32>
    %74 = vector.extract_strided_slice %54 {offsets = [1, 1], sizes = [16, 16], strides = [1, 1]} : vector<18x18xf32> to vector<16x16xf32>
    %c1_22 = arith.constant 1 : index
    %c4_23 = arith.constant 4 : index
    %75 = memref.load %arg3[%c1_22, %c4_23] : memref<4x9xf32, #tpu.memory_space<smem>>
    %76 = vector.broadcast %75 : f32 to vector<16x16xf32>
    %77 = arith.mulf %74, %76 : vector<16x16xf32>
    %78 = arith.addf %73, %77 : vector<16x16xf32>
    %79 = vector.extract_strided_slice %54 {offsets = [1, 2], sizes = [16, 16], strides = [1, 1]} : vector<18x18xf32> to vector<16x16xf32>
    %c1_24 = arith.constant 1 : index
    %c5_25 = arith.constant 5 : index
    %80 = memref.load %arg3[%c1_24, %c5_25] : memref<4x9xf32, #tpu.memory_space<smem>>
    %81 = vector.broadcast %80 : f32 to vector<16x16xf32>
    %82 = arith.mulf %79, %81 : vector<16x16xf32>
    %83 = arith.addf %78, %82 : vector<16x16xf32>
    %84 = vector.extract_strided_slice %54 {offsets = [2, 0], sizes = [16, 16], strides = [1, 1]} : vector<18x18xf32> to vector<16x16xf32>
    %c1_26 = arith.constant 1 : index
    %c6_27 = arith.constant 6 : index
    %85 = memref.load %arg3[%c1_26, %c6_27] : memref<4x9xf32, #tpu.memory_space<smem>>
    %86 = vector.broadcast %85 : f32 to vector<16x16xf32>
    %87 = arith.mulf %84, %86 : vector<16x16xf32>
    %88 = arith.addf %83, %87 : vector<16x16xf32>
    %89 = vector.extract_strided_slice %54 {offsets = [2, 1], sizes = [16, 16], strides = [1, 1]} : vector<18x18xf32> to vector<16x16xf32>
    %c1_28 = arith.constant 1 : index
    %c7_29 = arith.constant 7 : index
    %90 = memref.load %arg3[%c1_28, %c7_29] : memref<4x9xf32, #tpu.memory_space<smem>>
    %91 = vector.broadcast %90 : f32 to vector<16x16xf32>
    %92 = arith.mulf %89, %91 : vector<16x16xf32>
    %93 = arith.addf %88, %92 : vector<16x16xf32>
    %94 = vector.extract_strided_slice %54 {offsets = [2, 2], sizes = [16, 16], strides = [1, 1]} : vector<18x18xf32> to vector<16x16xf32>
    %c1_30 = arith.constant 1 : index
    %c8_31 = arith.constant 8 : index
    %95 = memref.load %arg3[%c1_30, %c8_31] : memref<4x9xf32, #tpu.memory_space<smem>>
    %96 = vector.broadcast %95 : f32 to vector<16x16xf32>
    %97 = arith.mulf %94, %96 : vector<16x16xf32>
    %98 = arith.addf %93, %97 : vector<16x16xf32>
    %c2_32 = arith.constant 2 : index
    %99 = arith.index_cast %4 : i32 to index
    %c0_33 = arith.constant 0 : index
    %100 = vector.load %arg6[%c2_32, %99, %c0_33] : memref<4x18x18xf32, #tpu.memory_space<vmem>>, vector<1x18x18xf32>
    %101 = vector.shape_cast %100 : vector<1x18x18xf32> to vector<18x18xf32>
    %102 = vector.extract_strided_slice %101 {offsets = [0, 0], sizes = [16, 16], strides = [1, 1]} : vector<18x18xf32> to vector<16x16xf32>
    %c2_34 = arith.constant 2 : index
    %c0_35 = arith.constant 0 : index
    %103 = memref.load %arg3[%c2_34, %c0_35] : memref<4x9xf32, #tpu.memory_space<smem>>
    %104 = vector.broadcast %103 : f32 to vector<16x16xf32>
    %105 = arith.mulf %102, %104 : vector<16x16xf32>
    %106 = vector.extract_strided_slice %101 {offsets = [0, 1], sizes = [16, 16], strides = [1, 1]} : vector<18x18xf32> to vector<16x16xf32>
    %c2_36 = arith.constant 2 : index
    %c1_37 = arith.constant 1 : index
    %107 = memref.load %arg3[%c2_36, %c1_37] : memref<4x9xf32, #tpu.memory_space<smem>>
    %108 = vector.broadcast %107 : f32 to vector<16x16xf32>
    %109 = arith.mulf %106, %108 : vector<16x16xf32>
    %110 = arith.addf %105, %109 : vector<16x16xf32>
    %111 = vector.extract_strided_slice %101 {offsets = [0, 2], sizes = [16, 16], strides = [1, 1]} : vector<18x18xf32> to vector<16x16xf32>
    %c2_38 = arith.constant 2 : index
    %c2_39 = arith.constant 2 : index
    %112 = memref.load %arg3[%c2_38, %c2_39] : memref<4x9xf32, #tpu.memory_space<smem>>
    %113 = vector.broadcast %112 : f32 to vector<16x16xf32>
    %114 = arith.mulf %111, %113 : vector<16x16xf32>
    %115 = arith.addf %110, %114 : vector<16x16xf32>
    %116 = vector.extract_strided_slice %101 {offsets = [1, 0], sizes = [16, 16], strides = [1, 1]} : vector<18x18xf32> to vector<16x16xf32>
    %c2_40 = arith.constant 2 : index
    %c3_41 = arith.constant 3 : index
    %117 = memref.load %arg3[%c2_40, %c3_41] : memref<4x9xf32, #tpu.memory_space<smem>>
    %118 = vector.broadcast %117 : f32 to vector<16x16xf32>
    %119 = arith.mulf %116, %118 : vector<16x16xf32>
    %120 = arith.addf %115, %119 : vector<16x16xf32>
    %121 = vector.extract_strided_slice %101 {offsets = [1, 1], sizes = [16, 16], strides = [1, 1]} : vector<18x18xf32> to vector<16x16xf32>
    %c2_42 = arith.constant 2 : index
    %c4_43 = arith.constant 4 : index
    %122 = memref.load %arg3[%c2_42, %c4_43] : memref<4x9xf32, #tpu.memory_space<smem>>
    %123 = vector.broadcast %122 : f32 to vector<16x16xf32>
    %124 = arith.mulf %121, %123 : vector<16x16xf32>
    %125 = arith.addf %120, %124 : vector<16x16xf32>
    %126 = vector.extract_strided_slice %101 {offsets = [1, 2], sizes = [16, 16], strides = [1, 1]} : vector<18x18xf32> to vector<16x16xf32>
    %c2_44 = arith.constant 2 : index
    %c5_45 = arith.constant 5 : index
    %127 = memref.load %arg3[%c2_44, %c5_45] : memref<4x9xf32, #tpu.memory_space<smem>>
    %128 = vector.broadcast %127 : f32 to vector<16x16xf32>
    %129 = arith.mulf %126, %128 : vector<16x16xf32>
    %130 = arith.addf %125, %129 : vector<16x16xf32>
    %131 = vector.extract_strided_slice %101 {offsets = [2, 0], sizes = [16, 16], strides = [1, 1]} : vector<18x18xf32> to vector<16x16xf32>
    %c2_46 = arith.constant 2 : index
    %c6_47 = arith.constant 6 : index
    %132 = memref.load %arg3[%c2_46, %c6_47] : memref<4x9xf32, #tpu.memory_space<smem>>
    %133 = vector.broadcast %132 : f32 to vector<16x16xf32>
    %134 = arith.mulf %131, %133 : vector<16x16xf32>
    %135 = arith.addf %130, %134 : vector<16x16xf32>
    %136 = vector.extract_strided_slice %101 {offsets = [2, 1], sizes = [16, 16], strides = [1, 1]} : vector<18x18xf32> to vector<16x16xf32>
    %c2_48 = arith.constant 2 : index
    %c7_49 = arith.constant 7 : index
    %137 = memref.load %arg3[%c2_48, %c7_49] : memref<4x9xf32, #tpu.memory_space<smem>>
    %138 = vector.broadcast %137 : f32 to vector<16x16xf32>
    %139 = arith.mulf %136, %138 : vector<16x16xf32>
    %140 = arith.addf %135, %139 : vector<16x16xf32>
    %141 = vector.extract_strided_slice %101 {offsets = [2, 2], sizes = [16, 16], strides = [1, 1]} : vector<18x18xf32> to vector<16x16xf32>
    %c2_50 = arith.constant 2 : index
    %c8_51 = arith.constant 8 : index
    %142 = memref.load %arg3[%c2_50, %c8_51] : memref<4x9xf32, #tpu.memory_space<smem>>
    %143 = vector.broadcast %142 : f32 to vector<16x16xf32>
    %144 = arith.mulf %141, %143 : vector<16x16xf32>
    %145 = arith.addf %140, %144 : vector<16x16xf32>
    %c3_52 = arith.constant 3 : index
    %146 = arith.index_cast %4 : i32 to index
    %c0_53 = arith.constant 0 : index
    %147 = vector.load %arg6[%c3_52, %146, %c0_53] : memref<4x18x18xf32, #tpu.memory_space<vmem>>, vector<1x18x18xf32>
    %148 = vector.shape_cast %147 : vector<1x18x18xf32> to vector<18x18xf32>
    %149 = vector.extract_strided_slice %148 {offsets = [0, 0], sizes = [16, 16], strides = [1, 1]} : vector<18x18xf32> to vector<16x16xf32>
    %c3_54 = arith.constant 3 : index
    %c0_55 = arith.constant 0 : index
    %150 = memref.load %arg3[%c3_54, %c0_55] : memref<4x9xf32, #tpu.memory_space<smem>>
    %151 = vector.broadcast %150 : f32 to vector<16x16xf32>
    %152 = arith.mulf %149, %151 : vector<16x16xf32>
    %153 = vector.extract_strided_slice %148 {offsets = [0, 1], sizes = [16, 16], strides = [1, 1]} : vector<18x18xf32> to vector<16x16xf32>
    %c3_56 = arith.constant 3 : index
    %c1_57 = arith.constant 1 : index
    %154 = memref.load %arg3[%c3_56, %c1_57] : memref<4x9xf32, #tpu.memory_space<smem>>
    %155 = vector.broadcast %154 : f32 to vector<16x16xf32>
    %156 = arith.mulf %153, %155 : vector<16x16xf32>
    %157 = arith.addf %152, %156 : vector<16x16xf32>
    %158 = vector.extract_strided_slice %148 {offsets = [0, 2], sizes = [16, 16], strides = [1, 1]} : vector<18x18xf32> to vector<16x16xf32>
    %c3_58 = arith.constant 3 : index
    %c2_59 = arith.constant 2 : index
    %159 = memref.load %arg3[%c3_58, %c2_59] : memref<4x9xf32, #tpu.memory_space<smem>>
    %160 = vector.broadcast %159 : f32 to vector<16x16xf32>
    %161 = arith.mulf %158, %160 : vector<16x16xf32>
    %162 = arith.addf %157, %161 : vector<16x16xf32>
    %163 = vector.extract_strided_slice %148 {offsets = [1, 0], sizes = [16, 16], strides = [1, 1]} : vector<18x18xf32> to vector<16x16xf32>
    %c3_60 = arith.constant 3 : index
    %c3_61 = arith.constant 3 : index
    %164 = memref.load %arg3[%c3_60, %c3_61] : memref<4x9xf32, #tpu.memory_space<smem>>
    %165 = vector.broadcast %164 : f32 to vector<16x16xf32>
    %166 = arith.mulf %163, %165 : vector<16x16xf32>
    %167 = arith.addf %162, %166 : vector<16x16xf32>
    %168 = vector.extract_strided_slice %148 {offsets = [1, 1], sizes = [16, 16], strides = [1, 1]} : vector<18x18xf32> to vector<16x16xf32>
    %c3_62 = arith.constant 3 : index
    %c4_63 = arith.constant 4 : index
    %169 = memref.load %arg3[%c3_62, %c4_63] : memref<4x9xf32, #tpu.memory_space<smem>>
    %170 = vector.broadcast %169 : f32 to vector<16x16xf32>
    %171 = arith.mulf %168, %170 : vector<16x16xf32>
    %172 = arith.addf %167, %171 : vector<16x16xf32>
    %173 = vector.extract_strided_slice %148 {offsets = [1, 2], sizes = [16, 16], strides = [1, 1]} : vector<18x18xf32> to vector<16x16xf32>
    %c3_64 = arith.constant 3 : index
    %c5_65 = arith.constant 5 : index
    %174 = memref.load %arg3[%c3_64, %c5_65] : memref<4x9xf32, #tpu.memory_space<smem>>
    %175 = vector.broadcast %174 : f32 to vector<16x16xf32>
    %176 = arith.mulf %173, %175 : vector<16x16xf32>
    %177 = arith.addf %172, %176 : vector<16x16xf32>
    %178 = vector.extract_strided_slice %148 {offsets = [2, 0], sizes = [16, 16], strides = [1, 1]} : vector<18x18xf32> to vector<16x16xf32>
    %c3_66 = arith.constant 3 : index
    %c6_67 = arith.constant 6 : index
    %179 = memref.load %arg3[%c3_66, %c6_67] : memref<4x9xf32, #tpu.memory_space<smem>>
    %180 = vector.broadcast %179 : f32 to vector<16x16xf32>
    %181 = arith.mulf %178, %180 : vector<16x16xf32>
    %182 = arith.addf %177, %181 : vector<16x16xf32>
    %183 = vector.extract_strided_slice %148 {offsets = [2, 1], sizes = [16, 16], strides = [1, 1]} : vector<18x18xf32> to vector<16x16xf32>
    %c3_68 = arith.constant 3 : index
    %c7_69 = arith.constant 7 : index
    %184 = memref.load %arg3[%c3_68, %c7_69] : memref<4x9xf32, #tpu.memory_space<smem>>
    %185 = vector.broadcast %184 : f32 to vector<16x16xf32>
    %186 = arith.mulf %183, %185 : vector<16x16xf32>
    %187 = arith.addf %182, %186 : vector<16x16xf32>
    %188 = vector.extract_strided_slice %148 {offsets = [2, 2], sizes = [16, 16], strides = [1, 1]} : vector<18x18xf32> to vector<16x16xf32>
    %c3_70 = arith.constant 3 : index
    %c8_71 = arith.constant 8 : index
    %189 = memref.load %arg3[%c3_70, %c8_71] : memref<4x9xf32, #tpu.memory_space<smem>>
    %190 = vector.broadcast %189 : f32 to vector<16x16xf32>
    %191 = arith.mulf %188, %190 : vector<16x16xf32>
    %192 = arith.addf %187, %191 : vector<16x16xf32>
    %c0_72 = arith.constant 0 : index
    %c0_73 = arith.constant 0 : index
    %193 = memref.load %arg4[%c0_72, %c0_73] : memref<4x8xf32, #tpu.memory_space<smem>>
    %194 = vector.broadcast %193 : f32 to vector<16x16xf32>
    %195 = arith.mulf %51, %194 : vector<16x16xf32>
    %c1_74 = arith.constant 1 : index
    %c0_75 = arith.constant 0 : index
    %196 = memref.load %arg4[%c1_74, %c0_75] : memref<4x8xf32, #tpu.memory_space<smem>>
    %197 = vector.broadcast %196 : f32 to vector<16x16xf32>
    %198 = arith.mulf %98, %197 : vector<16x16xf32>
    %199 = arith.addf %195, %198 : vector<16x16xf32>
    %c2_76 = arith.constant 2 : index
    %c0_77 = arith.constant 0 : index
    %200 = memref.load %arg4[%c2_76, %c0_77] : memref<4x8xf32, #tpu.memory_space<smem>>
    %201 = vector.broadcast %200 : f32 to vector<16x16xf32>
    %202 = arith.mulf %145, %201 : vector<16x16xf32>
    %203 = arith.addf %199, %202 : vector<16x16xf32>
    %c3_78 = arith.constant 3 : index
    %c0_79 = arith.constant 0 : index
    %204 = memref.load %arg4[%c3_78, %c0_79] : memref<4x8xf32, #tpu.memory_space<smem>>
    %205 = vector.broadcast %204 : f32 to vector<16x16xf32>
    %206 = arith.mulf %192, %205 : vector<16x16xf32>
    %207 = arith.addf %203, %206 : vector<16x16xf32>
    %c0_80 = arith.constant 0 : index
    %c0_81 = arith.constant 0 : index
    %c0_82 = arith.constant 0 : index
    %c0_83 = arith.constant 0 : index
    %208 = vector.load %arg5[%c0_80, %c0_81, %c0_82, %c0_83] : memref<1x8x16x16xf32, #tpu.memory_space<vmem>>, vector<1x1x16x16xf32>
    %209 = vector.shape_cast %208 : vector<1x1x16x16xf32> to vector<16x16xf32>
    %210 = vector.shape_cast %207 : vector<16x16xf32> to vector<1x1x16x16xf32>
    tpu.vector_store %arg5[%c0_80, %c0_81, %c0_82, %c0_83], %210 {strides = array<i32>} : memref<1x8x16x16xf32, #tpu.memory_space<vmem>>, vector<1x1x16x16xf32>,
    %c0_84 = arith.constant 0 : index
    %c1_85 = arith.constant 1 : index
    %211 = memref.load %arg4[%c0_84, %c1_85] : memref<4x8xf32, #tpu.memory_space<smem>>
    %212 = vector.broadcast %211 : f32 to vector<16x16xf32>
    %213 = arith.mulf %51, %212 : vector<16x16xf32>
    %c1_86 = arith.constant 1 : index
    %c1_87 = arith.constant 1 : index
    %214 = memref.load %arg4[%c1_86, %c1_87] : memref<4x8xf32, #tpu.memory_space<smem>>
    %215 = vector.broadcast %214 : f32 to vector<16x16xf32>
    %216 = arith.mulf %98, %215 : vector<16x16xf32>
    %217 = arith.addf %213, %216 : vector<16x16xf32>
    %c2_88 = arith.constant 2 : index
    %c1_89 = arith.constant 1 : index
    %218 = memref.load %arg4[%c2_88, %c1_89] : memref<4x8xf32, #tpu.memory_space<smem>>
    %219 = vector.broadcast %218 : f32 to vector<16x16xf32>
    %220 = arith.mulf %145, %219 : vector<16x16xf32>
    %221 = arith.addf %217, %220 : vector<16x16xf32>
    %c3_90 = arith.constant 3 : index
    %c1_91 = arith.constant 1 : index
    %222 = memref.load %arg4[%c3_90, %c1_91] : memref<4x8xf32, #tpu.memory_space<smem>>
    %223 = vector.broadcast %222 : f32 to vector<16x16xf32>
    %224 = arith.mulf %192, %223 : vector<16x16xf32>
    %225 = arith.addf %221, %224 : vector<16x16xf32>
    %c0_92 = arith.constant 0 : index
    %c1_93 = arith.constant 1 : index
    %c0_94 = arith.constant 0 : index
    %c0_95 = arith.constant 0 : index
    %226 = vector.load %arg5[%c0_92, %c1_93, %c0_94, %c0_95] : memref<1x8x16x16xf32, #tpu.memory_space<vmem>>, vector<1x1x16x16xf32>
    %227 = vector.shape_cast %226 : vector<1x1x16x16xf32> to vector<16x16xf32>
    %228 = vector.shape_cast %225 : vector<16x16xf32> to vector<1x1x16x16xf32>
    tpu.vector_store %arg5[%c0_92, %c1_93, %c0_94, %c0_95], %228 {strides = array<i32>} : memref<1x8x16x16xf32, #tpu.memory_space<vmem>>, vector<1x1x16x16xf32>,
    %c0_96 = arith.constant 0 : index
    %c2_97 = arith.constant 2 : index
    %229 = memref.load %arg4[%c0_96, %c2_97] : memref<4x8xf32, #tpu.memory_space<smem>>
    %230 = vector.broadcast %229 : f32 to vector<16x16xf32>
    %231 = arith.mulf %51, %230 : vector<16x16xf32>
    %c1_98 = arith.constant 1 : index
    %c2_99 = arith.constant 2 : index
    %232 = memref.load %arg4[%c1_98, %c2_99] : memref<4x8xf32, #tpu.memory_space<smem>>
    %233 = vector.broadcast %232 : f32 to vector<16x16xf32>
    %234 = arith.mulf %98, %233 : vector<16x16xf32>
    %235 = arith.addf %231, %234 : vector<16x16xf32>
    %c2_100 = arith.constant 2 : index
    %c2_101 = arith.constant 2 : index
    %236 = memref.load %arg4[%c2_100, %c2_101] : memref<4x8xf32, #tpu.memory_space<smem>>
    %237 = vector.broadcast %236 : f32 to vector<16x16xf32>
    %238 = arith.mulf %145, %237 : vector<16x16xf32>
    %239 = arith.addf %235, %238 : vector<16x16xf32>
    %c3_102 = arith.constant 3 : index
    %c2_103 = arith.constant 2 : index
    %240 = memref.load %arg4[%c3_102, %c2_103] : memref<4x8xf32, #tpu.memory_space<smem>>
    %241 = vector.broadcast %240 : f32 to vector<16x16xf32>
    %242 = arith.mulf %192, %241 : vector<16x16xf32>
    %243 = arith.addf %239, %242 : vector<16x16xf32>
    %c0_104 = arith.constant 0 : index
    %c2_105 = arith.constant 2 : index
    %c0_106 = arith.constant 0 : index
    %c0_107 = arith.constant 0 : index
    %244 = vector.load %arg5[%c0_104, %c2_105, %c0_106, %c0_107] : memref<1x8x16x16xf32, #tpu.memory_space<vmem>>, vector<1x1x16x16xf32>
    %245 = vector.shape_cast %244 : vector<1x1x16x16xf32> to vector<16x16xf32>
    %246 = vector.shape_cast %243 : vector<16x16xf32> to vector<1x1x16x16xf32>
    tpu.vector_store %arg5[%c0_104, %c2_105, %c0_106, %c0_107], %246 {strides = array<i32>} : memref<1x8x16x16xf32, #tpu.memory_space<vmem>>, vector<1x1x16x16xf32>,
    %c0_108 = arith.constant 0 : index
    %c3_109 = arith.constant 3 : index
    %247 = memref.load %arg4[%c0_108, %c3_109] : memref<4x8xf32, #tpu.memory_space<smem>>
    %248 = vector.broadcast %247 : f32 to vector<16x16xf32>
    %249 = arith.mulf %51, %248 : vector<16x16xf32>
    %c1_110 = arith.constant 1 : index
    %c3_111 = arith.constant 3 : index
    %250 = memref.load %arg4[%c1_110, %c3_111] : memref<4x8xf32, #tpu.memory_space<smem>>
    %251 = vector.broadcast %250 : f32 to vector<16x16xf32>
    %252 = arith.mulf %98, %251 : vector<16x16xf32>
    %253 = arith.addf %249, %252 : vector<16x16xf32>
    %c2_112 = arith.constant 2 : index
    %c3_113 = arith.constant 3 : index
    %254 = memref.load %arg4[%c2_112, %c3_113] : memref<4x8xf32, #tpu.memory_space<smem>>
    %255 = vector.broadcast %254 : f32 to vector<16x16xf32>
    %256 = arith.mulf %145, %255 : vector<16x16xf32>
    %257 = arith.addf %253, %256 : vector<16x16xf32>
    %c3_114 = arith.constant 3 : index
    %c3_115 = arith.constant 3 : index
    %258 = memref.load %arg4[%c3_114, %c3_115] : memref<4x8xf32, #tpu.memory_space<smem>>
    %259 = vector.broadcast %258 : f32 to vector<16x16xf32>
    %260 = arith.mulf %192, %259 : vector<16x16xf32>
    %261 = arith.addf %257, %260 : vector<16x16xf32>
    %c0_116 = arith.constant 0 : index
    %c3_117 = arith.constant 3 : index
    %c0_118 = arith.constant 0 : index
    %c0_119 = arith.constant 0 : index
    %262 = vector.load %arg5[%c0_116, %c3_117, %c0_118, %c0_119] : memref<1x8x16x16xf32, #tpu.memory_space<vmem>>, vector<1x1x16x16xf32>
    %263 = vector.shape_cast %262 : vector<1x1x16x16xf32> to vector<16x16xf32>
    %264 = vector.shape_cast %261 : vector<16x16xf32> to vector<1x1x16x16xf32>
    tpu.vector_store %arg5[%c0_116, %c3_117, %c0_118, %c0_119], %264 {strides = array<i32>} : memref<1x8x16x16xf32, #tpu.memory_space<vmem>>, vector<1x1x16x16xf32>,
    %c0_120 = arith.constant 0 : index
    %c4_121 = arith.constant 4 : index
    %265 = memref.load %arg4[%c0_120, %c4_121] : memref<4x8xf32, #tpu.memory_space<smem>>
    %266 = vector.broadcast %265 : f32 to vector<16x16xf32>
    %267 = arith.mulf %51, %266 : vector<16x16xf32>
    %c1_122 = arith.constant 1 : index
    %c4_123 = arith.constant 4 : index
    %268 = memref.load %arg4[%c1_122, %c4_123] : memref<4x8xf32, #tpu.memory_space<smem>>
    %269 = vector.broadcast %268 : f32 to vector<16x16xf32>
    %270 = arith.mulf %98, %269 : vector<16x16xf32>
    %271 = arith.addf %267, %270 : vector<16x16xf32>
    %c2_124 = arith.constant 2 : index
    %c4_125 = arith.constant 4 : index
    %272 = memref.load %arg4[%c2_124, %c4_125] : memref<4x8xf32, #tpu.memory_space<smem>>
    %273 = vector.broadcast %272 : f32 to vector<16x16xf32>
    %274 = arith.mulf %145, %273 : vector<16x16xf32>
    %275 = arith.addf %271, %274 : vector<16x16xf32>
    %c3_126 = arith.constant 3 : index
    %c4_127 = arith.constant 4 : index
    %276 = memref.load %arg4[%c3_126, %c4_127] : memref<4x8xf32, #tpu.memory_space<smem>>
    %277 = vector.broadcast %276 : f32 to vector<16x16xf32>
    %278 = arith.mulf %192, %277 : vector<16x16xf32>
    %279 = arith.addf %275, %278 : vector<16x16xf32>
    %c0_128 = arith.constant 0 : index
    %c4_129 = arith.constant 4 : index
    %c0_130 = arith.constant 0 : index
    %c0_131 = arith.constant 0 : index
    %280 = vector.load %arg5[%c0_128, %c4_129, %c0_130, %c0_131] : memref<1x8x16x16xf32, #tpu.memory_space<vmem>>, vector<1x1x16x16xf32>
    %281 = vector.shape_cast %280 : vector<1x1x16x16xf32> to vector<16x16xf32>
    %282 = vector.shape_cast %279 : vector<16x16xf32> to vector<1x1x16x16xf32>
    tpu.vector_store %arg5[%c0_128, %c4_129, %c0_130, %c0_131], %282 {strides = array<i32>} : memref<1x8x16x16xf32, #tpu.memory_space<vmem>>, vector<1x1x16x16xf32>,
    %c0_132 = arith.constant 0 : index
    %c5_133 = arith.constant 5 : index
    %283 = memref.load %arg4[%c0_132, %c5_133] : memref<4x8xf32, #tpu.memory_space<smem>>
    %284 = vector.broadcast %283 : f32 to vector<16x16xf32>
    %285 = arith.mulf %51, %284 : vector<16x16xf32>
    %c1_134 = arith.constant 1 : index
    %c5_135 = arith.constant 5 : index
    %286 = memref.load %arg4[%c1_134, %c5_135] : memref<4x8xf32, #tpu.memory_space<smem>>
    %287 = vector.broadcast %286 : f32 to vector<16x16xf32>
    %288 = arith.mulf %98, %287 : vector<16x16xf32>
    %289 = arith.addf %285, %288 : vector<16x16xf32>
    %c2_136 = arith.constant 2 : index
    %c5_137 = arith.constant 5 : index
    %290 = memref.load %arg4[%c2_136, %c5_137] : memref<4x8xf32, #tpu.memory_space<smem>>
    %291 = vector.broadcast %290 : f32 to vector<16x16xf32>
    %292 = arith.mulf %145, %291 : vector<16x16xf32>
    %293 = arith.addf %289, %292 : vector<16x16xf32>
    %c3_138 = arith.constant 3 : index
    %c5_139 = arith.constant 5 : index
    %294 = memref.load %arg4[%c3_138, %c5_139] : memref<4x8xf32, #tpu.memory_space<smem>>
    %295 = vector.broadcast %294 : f32 to vector<16x16xf32>
    %296 = arith.mulf %192, %295 : vector<16x16xf32>
    %297 = arith.addf %293, %296 : vector<16x16xf32>
    %c0_140 = arith.constant 0 : index
    %c5_141 = arith.constant 5 : index
    %c0_142 = arith.constant 0 : index
    %c0_143 = arith.constant 0 : index
    %298 = vector.load %arg5[%c0_140, %c5_141, %c0_142, %c0_143] : memref<1x8x16x16xf32, #tpu.memory_space<vmem>>, vector<1x1x16x16xf32>
    %299 = vector.shape_cast %298 : vector<1x1x16x16xf32> to vector<16x16xf32>
    %300 = vector.shape_cast %297 : vector<16x16xf32> to vector<1x1x16x16xf32>
    tpu.vector_store %arg5[%c0_140, %c5_141, %c0_142, %c0_143], %300 {strides = array<i32>} : memref<1x8x16x16xf32, #tpu.memory_space<vmem>>, vector<1x1x16x16xf32>,
    %c0_144 = arith.constant 0 : index
    %c6_145 = arith.constant 6 : index
    %301 = memref.load %arg4[%c0_144, %c6_145] : memref<4x8xf32, #tpu.memory_space<smem>>
    %302 = vector.broadcast %301 : f32 to vector<16x16xf32>
    %303 = arith.mulf %51, %302 : vector<16x16xf32>
    %c1_146 = arith.constant 1 : index
    %c6_147 = arith.constant 6 : index
    %304 = memref.load %arg4[%c1_146, %c6_147] : memref<4x8xf32, #tpu.memory_space<smem>>
    %305 = vector.broadcast %304 : f32 to vector<16x16xf32>
    %306 = arith.mulf %98, %305 : vector<16x16xf32>
    %307 = arith.addf %303, %306 : vector<16x16xf32>
    %c2_148 = arith.constant 2 : index
    %c6_149 = arith.constant 6 : index
    %308 = memref.load %arg4[%c2_148, %c6_149] : memref<4x8xf32, #tpu.memory_space<smem>>
    %309 = vector.broadcast %308 : f32 to vector<16x16xf32>
    %310 = arith.mulf %145, %309 : vector<16x16xf32>
    %311 = arith.addf %307, %310 : vector<16x16xf32>
    %c3_150 = arith.constant 3 : index
    %c6_151 = arith.constant 6 : index
    %312 = memref.load %arg4[%c3_150, %c6_151] : memref<4x8xf32, #tpu.memory_space<smem>>
    %313 = vector.broadcast %312 : f32 to vector<16x16xf32>
    %314 = arith.mulf %192, %313 : vector<16x16xf32>
    %315 = arith.addf %311, %314 : vector<16x16xf32>
    %c0_152 = arith.constant 0 : index
    %c6_153 = arith.constant 6 : index
    %c0_154 = arith.constant 0 : index
    %c0_155 = arith.constant 0 : index
    %316 = vector.load %arg5[%c0_152, %c6_153, %c0_154, %c0_155] : memref<1x8x16x16xf32, #tpu.memory_space<vmem>>, vector<1x1x16x16xf32>
    %317 = vector.shape_cast %316 : vector<1x1x16x16xf32> to vector<16x16xf32>
    %318 = vector.shape_cast %315 : vector<16x16xf32> to vector<1x1x16x16xf32>
    tpu.vector_store %arg5[%c0_152, %c6_153, %c0_154, %c0_155], %318 {strides = array<i32>} : memref<1x8x16x16xf32, #tpu.memory_space<vmem>>, vector<1x1x16x16xf32>,
    %c0_156 = arith.constant 0 : index
    %c7_157 = arith.constant 7 : index
    %319 = memref.load %arg4[%c0_156, %c7_157] : memref<4x8xf32, #tpu.memory_space<smem>>
    %320 = vector.broadcast %319 : f32 to vector<16x16xf32>
    %321 = arith.mulf %51, %320 : vector<16x16xf32>
    %c1_158 = arith.constant 1 : index
    %c7_159 = arith.constant 7 : index
    %322 = memref.load %arg4[%c1_158, %c7_159] : memref<4x8xf32, #tpu.memory_space<smem>>
    %323 = vector.broadcast %322 : f32 to vector<16x16xf32>
    %324 = arith.mulf %98, %323 : vector<16x16xf32>
    %325 = arith.addf %321, %324 : vector<16x16xf32>
    %c2_160 = arith.constant 2 : index
    %c7_161 = arith.constant 7 : index
    %326 = memref.load %arg4[%c2_160, %c7_161] : memref<4x8xf32, #tpu.memory_space<smem>>
    %327 = vector.broadcast %326 : f32 to vector<16x16xf32>
    %328 = arith.mulf %145, %327 : vector<16x16xf32>
    %329 = arith.addf %325, %328 : vector<16x16xf32>
    %c3_162 = arith.constant 3 : index
    %c7_163 = arith.constant 7 : index
    %330 = memref.load %arg4[%c3_162, %c7_163] : memref<4x8xf32, #tpu.memory_space<smem>>
    %331 = vector.broadcast %330 : f32 to vector<16x16xf32>
    %332 = arith.mulf %192, %331 : vector<16x16xf32>
    %333 = arith.addf %329, %332 : vector<16x16xf32>
    %c0_164 = arith.constant 0 : index
    %c7_165 = arith.constant 7 : index
    %c0_166 = arith.constant 0 : index
    %c0_167 = arith.constant 0 : index
    %334 = vector.load %arg5[%c0_164, %c7_165, %c0_166, %c0_167] : memref<1x8x16x16xf32, #tpu.memory_space<vmem>>, vector<1x1x16x16xf32>
    %335 = vector.shape_cast %334 : vector<1x1x16x16xf32> to vector<16x16xf32>
    %336 = vector.shape_cast %333 : vector<16x16xf32> to vector<1x1x16x16xf32>
    tpu.vector_store %arg5[%c0_164, %c7_165, %c0_166, %c0_167], %336 {strides = array<i32>} : memref<1x8x16x16xf32, #tpu.memory_space<vmem>>, vector<1x1x16x16xf32>,
    return
  }
  func.func @transform_0(%arg0: i32, %arg1: i32) -> (i32, i32, i32, i32) {
    %c0_i32 = arith.constant 0 : i32
    %c0_i32_0 = arith.constant 0 : i32
    %c0_i32_1 = arith.constant 0 : i32
    %c0_i32_2 = arith.constant 0 : i32
    return %arg0, %c0_i32, %c0_i32_0, %c0_i32_1 : i32, i32, i32, i32
  }
  func.func @transform_1(%arg0: i32, %arg1: i32) -> (i32, i32) {
    %c0_i32 = arith.constant 0 : i32
    %c0_i32_0 = arith.constant 0 : i32
    %c0_i32_1 = arith.constant 0 : i32
    return %c0_i32, %c0_i32_0 : i32, i32
  }
  func.func @transform_2(%arg0: i32, %arg1: i32) -> (i32, i32) {
    %c0_i32 = arith.constant 0 : i32
    %c0_i32_0 = arith.constant 0 : i32
    %c0_i32_1 = arith.constant 0 : i32
    return %c0_i32, %c0_i32_0 : i32, i32
  }
  func.func @transform_3(%arg0: i32, %arg1: i32) -> (i32, i32, i32, i32) {
    %c0_i32 = arith.constant 0 : i32
    %c0_i32_0 = arith.constant 0 : i32
    %c0_i32_1 = arith.constant 0 : i32
    return %arg0, %c0_i32, %arg1, %c0_i32_0 : i32, i32, i32, i32
  }
}

</mosaic_0001>

<bundles_post_ra>
// kernel: tpu_custom_call.1
= control target key start
LH: loop header
LB: loop body
LE: loop exit
PB: predicated region body
PF: predicated region fallthrough
CT: control target
= control target key end

     0   :  { %s2589_s0 = inlined_call_operand.hbm [shape: f32[2,4,16,16], index: 0, kind: input, shape index: {}]   ;;  %s2590_s1 = inlined_call_operand.hbm [shape: f32[4,9], index: 1, kind: input, shape index: {}]   ;;  %s2591_s2 = inlined_call_operand.vmem [shape: f32[4,8], index: 2, kind: input, shape index: {}]   ;;  %s2592_s3 = inlined_call_operand.hbm [shape: f32[2,8,16,16], index: 3, kind: output, shape index: {}]  }
   0x1   :  { %2608 = sst [smem:[#allocation22_spill]] %s2589_s0 }
   0x2   :  { %2609 = sst [smem:[#allocation23_spill]] %s2590_s1 }
   0x3   :  { %2610 = sst [smem:[#allocation24_spill]] %s2591_s2 }
   0x4   :  { %8 = vsyncpa [#allocation4], 0 }
   0x5   :  { %10 = vsyncpa [#allocation4 + $0x1], 0 }
   0x6   :  { %11 = vsyncpa [#allocation6], 0 }
   0x7   :  { %12 = vsyncpa [#allocation7], 0 }
   0x8   :  { %13 = vsyncpa [#allocation5], 0 }
   0x9   :  { %15 = vsyncpa [#allocation5 + $0x1], 0  ;;  %s1636_s12 = smov 0   ;;  %s1638_s13 = smov 0  }
   0xa   :  { %s1640_s14 = smov 0   ;;  %s1642_s15 = smov 0  }
   0xb   :  { %s1644_s16 = smov 0   ;;  %s1646_s17 = smov 0  }
   0xc LB: > { %2611 = sst [smem:[#allocation15_spill]] %s1586_s13  ;;  %s1253_s18 = sadd.s32 4294967295, %s1602_s17   ;;  %s1602_s17 = sphi %s1646_s17, %s21_s17   ;;  %s1598_s16 = sphi %s1644_s16, %s2641_s16   ;;  %s1594_s15 = sphi %s1642_s15, %s2640_s15   ;;  %s1590_s14 = sphi %s1640_s14, %s2639_s14   ;;  %s1586_s13 = sphi %s1638_s13, %s2638_s13   ;;  %s1582_s12 = sphi %s1636_s12, %s2637_s12  }
   0xd   : > { %2612 = sst [smem:[#allocation16_spill]] %s1590_s14  ;;  %s1254_s19 = sadd.s32 4294967294, %s1602_s17  }
   0xe   : > { %2613 = sst [smem:[#allocation17_spill]] %s1598_s16  ;;  %s40_s20 = sadd.s32 1, %s1590_s14 }
   0xf   : > { %2614 = sst [smem:[#allocation18_spill]] %s1602_s17  ;;  %p47_p0 = scmp.ne.s32.totalorder %s1590_s14, %s1586_s13 }
  0x10   : > { %p48_p1 = scmp.eq.s32.totalorder %s1602_s17, 0  ;;  %p53_p2 = scmp.ne.s32.totalorder %s1586_s13, %s1582_s12 }
  0x11   : > { %p1674_p3 = scmp.eq.s32.totalorder %s1253_s18, 0  ;;  %p121_p4 = scmp.eq.s32.totalorder %s1253_s18, 1 }
  0x12   : > { %p49_p5 = por %p48_p1, %p47_p0  ;;  %p127_p6 = scmp.eq.s32.totalorder %s1254_s19, 1 }
  0x13   : > { %s2615_s21 = scalar_select %p1674_p3, 1, 0 }
  0x14   : > { %p1680_p7 = por %p1674_p3, %p53_p2  ;;  %p1684_p8 = por %p121_p4, %p47_p0 }
  0x15   : > { %p1688_p9 = por %p127_p6, %p53_p2  ;;  %p1255_p10 = scmp.ge.s32.totalorder %s1602_s17, 1 }
  0x16   : > { %s2616_s22 = scalar_select %p1680_p7, 1, 0 }
  0x17   : > { %s2617_s23 = scalar_select %p1684_p8, 1, 0 }
  0x18   : > { %s2618_s24 = scalar_select %p1688_p9, 1, 0 }
  0x19   : > { %p134_p11 = scmp.lt.s32.totalorder %s1602_s17, 3  ;;  %p1392_p1 = scmp.lt.s32.totalorder %s1602_s17, 2 }
  0x1a   : > { %2619 = sst [smem:[#allocation19_spill]] %s2618_s24  ;;  %s2621_s2 = sld [smem:[#allocation24_spill]] }
  0x1b   : > { %p1695_p13 = pnand %p1255_p10, %p134_p11  ;;  %p1705_p4 = pnand %p1392_p1, %p49_p5 }
  0x1c   : > { %s167_s4 = sand.u32 1, %s1590_s14   ;;  %s33_s5 = sadd.s32 1, %s1598_s16 }
  0x1d   : > { %p1375_p0 = pneg %p1695_p13  ;;  %s2624_s1 = sld [smem:[#allocation23_spill]] }
  0x1f   : > { %p1711_p2 = pnand %p1375_p0, %p1674_p3 }
  0x20   : > { %s156_s28 = sshll.u32 %s2621_s2, 4  ;;  %s157_s28 = int_to_ptr.vmem [resolvable:$true] %s156_s28 }
  0x21   : > { %p1456_p6 = pneg %p1711_p2 }
  0x23   : > { %s1454_s8 = scalar_lea.hbm %s2624_s1, 64 }
  0x24   : > { %p1455_p5 = scmp.ne.s32.totalorder %s2624_s1, %s1454_s8  ;;  %p1461_p1 = scmp.lt.u32.totalorder %s1454_s8, %s2624_s1 }
  0x26   : > { %p1457_p10 = pnand %p1456_p6, %p1455_p5 }
  0x28   : > { %p1458_p11 = pneg %p1457_p10 }
  0x2a   : > { %p1463_p0 = pnand %p1461_p1, %p1458_p11 }
  0x2c   : > { %1466 = shalt.err (!%p1463_p0)
}
  0x2d   : > { %s1604_s19 = smov [#allocation8]   ;;  %s1467_s6 = scalar_lea.vmem %s157_s28, 64 }
  0x2e   : > { %1378 = dma.hbm_to_smem (!%p1711_p2), %s2624_s1, 64, %s1604_s19, [#allocation6]  }
  0x2f   : > { %p1468_p12 = scmp.ne.s32.totalorder %s157_s28, %s1467_s6  ;;  %p1475_p3 = scmp.lt.s32.totalorder %s157_s28, %s157_s28 }
  0x30   : > { %p1476_p5 = scmp.lt.s32.totalorder %s1467_s6, %s1467_s6 }
  0x31   : > { %p1470_p9 = pnand %p1468_p12, %p1456_p6 }
  0x32   : > { %p1477_p10 = por %p1476_p5, %p1475_p3 }
  0x33   : > { %p1471_p8 = pneg %p1470_p9 }
  0x35   : > { %p1478_p7 = pnand %p1477_p10, %p1471_p8 }
  0x37   : > { %1481 = shalt.err (!%p1478_p7)
}
  0x38   : > { %s1605_s7 = smov [#allocation9]   ;;  %p35_p11 = scmp.ge.s32.totalorder %s33_s5, 2 }
  0x39   : > { %1381 = dma.vmem_to_smem (!%p1711_p2), %s157_s28, 64, %s1605_s7, [#allocation7]  }
  0x3a   : > { %s1259_s8 = sshll.u32 %s167_s4, 6  ;;  %s1361_s9 = sshll.u32 %s1598_s16, 10 }
  0x3b   : > { %s2643_s5 = smov (%p35_p11, %s33_s5), 0  ;;  %s2626_s0 = sld [smem:[#allocation22_spill]] }
  0x3c   : > { %2625 = sst [smem:[#allocation20_spill]] %s2643_s5  ;;  %s37_s18 = ssub.s32 %s1598_s16, %s2643_s5 }
  0x3d   : > { %s171_s19 = scalar_lea.vmem [#allocation3], %s1259_s8  ;;  %p38_p3 = scmp.eq.s32.totalorder %s37_s18, 0 }
  0x3e   : > { %s178_s28 = sshll.u32 %s171_s19, 4  ;;  %s1756_s27 = scalar_lea.sflag [#allocation4], %s167_s4  ;;  %s1747_s28 = int_to_ptr.vmem [resolvable:$true] %s178_s28 }
  0x3f   : > { %s1752_s26 = scalar_select %p38_p3, %s1590_s14, %s40_s20  }
  0x40   : > { %p1484_p8 = pneg %p1705_p4 }
  0x41   : > { %s1743_s30 = scalar_lea.hbm %s2626_s0, %s1361_s9  ;;  %2627 = sst [smem:[#allocation21_spill]] %s1752_s26 }
  0x42   : > { %s1482_s6 = scalar_lea.hbm %s1743_s30, 1024  ;;  %s1487_s9 = scalar_lea.hbm %s2626_s0, 2048 }
  0x43   : > { %p1483_p7 = scmp.ne.s32.totalorder %s1743_s30, %s1482_s6  ;;  %p1488_p2 = scmp.lt.u32.totalorder %s1743_s30, %s2626_s0 }
  0x44   : > { %p1489_p6 = scmp.lt.u32.totalorder %s1487_s9, %s1482_s6  ;;  %p1491_p0 = scmp.lt.u32.totalorder %s1482_s6, %s1743_s30 }
  0x45   : > { %p1485_p9 = pnand %p1484_p8, %p1483_p7 }
  0x46   : > { %p1490_p1 = por %p1489_p6, %p1488_p2 }
  0x47   : > { %p1486_p12 = pneg %p1485_p9 }
  0x48   : > { %p1492_p5 = por %p1491_p0, %p1490_p1 }
  0x4a   : > { %p1493_p10 = pnand %p1492_p5, %p1486_p12 }
  0x4c   : > { %1496 = shalt.err (!%p1493_p10)
}
  0x4d   : > { %s1497_s20 = scalar_lea.vmem %s1747_s28, 1024  ;;  %s1606_s4 = smov [#allocation3]  }
  0x4e   : > { %p1498_p11 = scmp.ne.s32.totalorder %s1747_s28, %s1497_s20  ;;  %s1502_s18 = sshll.u32 %s1606_s4, 4  ;;  %s1503_s18 = int_to_ptr.vmem [resolvable:$false] %s1502_s18 }
  0x4f   : > { %s1504_s19 = scalar_lea.vmem %s1503_s18, 2048  ;;  %p1505_p9 = scmp.lt.s32.totalorder %s1747_s28, %s1503_s18 }
  0x50   : > { %p1500_p3 = pnand %p1498_p11, %p1484_p8  ;;  %p1506_p2 = scmp.lt.s32.totalorder %s1504_s19, %s1497_s20 }
  0x52   : > { %p1501_p7 = pneg %p1500_p3  ;;  %p1507_p6 = por %p1506_p2, %p1505_p9 }
  0x54   : > { %p1508_p1 = pnand %p1507_p6, %p1501_p7 }
  0x56   : > { %1511 = shalt.err (!%p1508_p1)
}
  0x57   : > { %s1607_s6 = smov 128   ;;  %s1608_s7 = smov 8  }
  0x58   : > { %1385 = dma.hbm_to_vmem [thread:$0]  (!%p1705_p4), %s1743_s30, 1024, %s1747_s28, %s1756_s27, %s1607_s6, %s1607_s6, %s1608_s7  }
  0x59   : > { %190 = sbr.rel (%p1695_p13) target bundleno = 474 (0x1da), region = 32  ;;  %s1787_s8 = sand.u32 (!%p1695_p13), 1, %s1586_s13  }
  0x5a   : > { %s1263_s9 = sshll.u32 (!%p1695_p13), %s1787_s8, 6  ;;  %s193_s10 = scalar_lea.sflag (!%p1695_p13), [#allocation4], %s1787_s8 }
  0x5b   : > { %s1791_s11 = scalar_lea.vmem (!%p1695_p13), [#allocation3], %s1263_s9  ;;  %p2628_p8 = scmp.ne.s32.totalorder (!%p1695_p13), %s2616_s22, 0 }
  0x60   : > { %1565 = dma.done.wait (%p2628_p8), %s193_s10, 1024  }
  0x61   : > { %1567 = vsyncadd (%p2628_p8), %s193_s10, 4294966272  ;;  %p2629_p4 = scmp.ne.s32.totalorder %s2615_s21, 0 }
  0x63   : > { %1569 = dma.done.wait (%p2629_p4), [#allocation6], 64  }
  0x64   : > { %1571 = vsyncadd (%p2629_p4), [#allocation6], 4294967232 }
  0x65   : > { %1573 = dma.done.wait (%p2629_p4), [#allocation7], 64  }
  0x66   : > { %1575 = vsyncadd (%p2629_p4), [#allocation7], 4294967232 }
  0x67   : > { %209 = sfence }
  0x68   : > { %v247_v0 = vld [vmem:[%s1791_s11] sm:$0xff]  ;;  %v249_v1 = vld [vmem:[%s1791_s11 + $0x10] sm:$0xff]  ;;  %vm233_vm0 = vcmask 146432   ;;  %s1609_s22 = smov 1   ;;  %vm236_vm1 = vcmask 140288   ;;  %v248_v2 = vld [vmem:[%s1791_s11 + $0x8] sm:$0xff] }
  0x69   : > { %263 = vrot.lane.b32.xlu0 %v247_v0, %s1609_s22  ;;  %267 = vrot.lane.b32.xlu1 %v249_v1, %s1609_s22  ;;  %v250_v3 = vld [vmem:[%s1791_s11 + $0x18] sm:$0xff]  ;;  %v1610_v4 = vmov 0.0   ;;  %v252_v5 = vld [vmem:[%s1791_s11 + $0x28] sm:$0xff]  ;;  %vm287_vm2 = vcmask 138248   ;;  %s1267_s21 = sld [smem:[#allocation8 + $0x1]]  ;;  %s1815_s25 = sld [smem:[#allocation8 + $0x2]] }
  0x6a   : > { %234 = vst.msk [vmem:[#allocation2] sm:$0xff] %vm233_vm0, %v1610_v4  ;;  %235 = vst.msk [vmem:[#allocation2 + $0x8] sm:$0xff] %vm233_vm0, %v1610_v4  ;;  %v251_v6 = vld [vmem:[%s1791_s11 + $0x20] sm:$0xff]  ;;  %v254_v7 = vld [vmem:[%s1791_s11 + $0x38] sm:$0xff]  ;;  %s1817_s29 = sld [smem:[#allocation8 + $0x81]]  ;;  %s1827_s30 = sld [smem:[#allocation8 + $0x82]] }
  0x6b   : > { %238 = vst.msk [vmem:[#allocation2 + $0x18] sm:$0xff] %vm233_vm0, %v1610_v4  ;;  %239 = vst.msk [vmem:[#allocation2 + $0x20] sm:$0xff] %vm233_vm0, %v1610_v4  ;;  %v253_v8 = vld [vmem:[%s1791_s11 + $0x30] sm:$0xff]  ;;  %s2599_s28 = smov 127   ;;  %s1835_s27 = sld [smem:[#allocation8 + $0x101]]  ;;  %vm401_vm3 = vcmask 1045504  }
  0x6c   : > { %241 = vst.msk [vmem:[#allocation2 + $0x30] sm:$0xff] %vm233_vm0, %v1610_v4  ;;  %242 = vst.msk [vmem:[#allocation2 + $0x38] sm:$0xff] %vm233_vm0, %v1610_v4  ;;  %s2597_s20 = smov 126   ;;  %s1844_s4 = sld [smem:[#allocation8 + $0x4]]  ;;  %vm341_vm4 = vcmask 1046528   ;;  %vm940_vm5 = vcmask 130048  }
  0x6d   : > { %244 = vst.msk [vmem:[#allocation2 + $0x48] sm:$0xff] %vm233_vm0, %v1610_v4  ;;  %245 = vst.msk [vmem:[#allocation2 + $0x50] sm:$0xff] %vm233_vm0, %v1610_v4  ;;  %265 = vrot.lane.b32.xlu0 %v248_v2, %s1609_s22  ;;  %269 = vrot.lane.b32.xlu1 %v250_v3, %s1609_s22  ;;  %s1846_s18 = sld [smem:[#allocation8 + $0x102]]  ;;  %s1848_s19 = sld [smem:[#allocation8 + $0x5]] }
  0x6e   : > { %237 = vst.msk [vmem:[#allocation2 + $0x10] sm:$0x3] %vm236_vm1, %v1610_v4  ;;  %240 = vst.msk [vmem:[#allocation2 + $0x28] sm:$0x3] %vm236_vm1, %v1610_v4  ;;  %s1851_s6 = sld [smem:[#allocation8 + $0x84]]  ;;  %s1853_s7 = sld [smem:[#allocation8 + $0x85]] }
  0x6f   : > { %243 = vst.msk [vmem:[#allocation2 + $0x40] sm:$0x3] %vm236_vm1, %v1610_v4  ;;  %246 = vst.msk [vmem:[#allocation2 + $0x58] sm:$0x3] %vm236_vm1, %v1610_v4  ;;  %v306_v13 = vstv %s1267_s21  ;;  %v320_v18 = vstv %s1815_s25  ;;  %s1858_s9 = sld [smem:[#allocation8 + $0x7]]  ;;  %s1860_s10 = sld [smem:[#allocation8 + $0x8]] }
  0x70   : > { %v463_v21 = vstv %s1817_s29  ;;  %v477_v29 = vstv %s1827_s30  ;;  %s1864_s11 = sld [smem:[#allocation8 + $0x181]]  ;;  %s1871_s21 = sld [smem:[#allocation8 + $0x104]] }
  0x71   : > { %273 = vrot.lane.b32.xlu1 %v252_v5, %s1609_s22  ;;  %271 = vrot.lane.b32.xlu0 %v251_v6, %s1609_s22  ;;  %v618_v31 = vstv %s1835_s27  ;;  %s1873_s25 = sld [smem:[#allocation8 + $0x105]]  ;;  %s1877_s29 = sld [smem:[#allocation8 + $0x182]] }
  0x72   : > { %s1879_s30 = sld [smem:[#allocation8 + $0x3]]  ;;  %s2630_s0 = smov 127   ;;  %v352_v38 = vstv %s1844_s4 }
  0x73   : > { %s2631_s27 = smov 126   ;;  %s1888_s1 = sld [smem:[#allocation8 + $0x83]]  ;;  %v632_v36 = vstv %s1846_s18  ;;  %v373_v41 = vstv %s1848_s19 }
  0x74   : > { %s1890_s2 = sld [smem:[#allocation8 + $0x86]]  ;;  %s1895_s5 = sld [smem:[#allocation8 + $0x103]]  ;;  %v508_v42 = vstv %s1851_s6  ;;  %v529_v45 = vstv %s1853_s7 }
  0x75   : > { %277 = vrot.lane.b32.xlu1 %v254_v7, %s1609_s22  ;;  %275 = vrot.lane.b32.xlu0 %v253_v8, %s1609_s22  ;;  %s1866_s22 = sld [smem:[#allocation8 + $0x87]]  ;;  %v1910_v46 = vstv %s1858_s9  ;;  %v1913_v47 = vstv %s1860_s10  ;;  %s1937_s4 = sld [smem:[#allocation8 + $0x106]] }
  0x76   : > { %v773_v44 = vstv %s1864_s11  ;;  %v663_v49 = vstv %s1871_s21  ;;  %s1298_s18 = sld [smem:[#allocation8 + $0x108]]  ;;  %s1309_s19 = sld [smem:[#allocation8 + $0x187]] }
  0x77   : > { %v787_v48 = vstv %s1877_s29  ;;  %v1918_v50 = vstv %s1873_s25  ;;  %s1310_s6 = sld [smem:[#allocation8 + $0x188]]  ;;  %s2284_s21 = sld [smem:[#allocation9 + $0x2]] }
  0x78   : > { %v1932_v55 = vstv %s1879_s30  ;;  %s301_s7 = sld [smem:[#allocation8]]  ;;  %s2286_s25 = sld [smem:[#allocation9 + $0x3]] }
  0x79   : > { %v1947_v60 = vstv %s1888_s1  ;;  %s1978_s1 = sld [smem:[#allocation8 + $0x183]]  ;;  %s1278_s9 = sld [smem:[#allocation8 + $0x80]] }
  0x7a   : > { %v1950_v61 = vstv %s1890_s2  ;;  %v1958_v2 = vstv %s1895_s5  ;;  %s1980_s2 = sld [smem:[#allocation8 + $0x186]]  ;;  %s2121_s5 = sld [smem:[#allocation8 + $0x185]] }
  0x7b   : > { %v1921_v51 = vstv %s1866_s22  ;;  %s1290_s10 = sld [smem:[#allocation8 + $0x100]]  ;;  %s2282_s22 = sld [smem:[#allocation9 + $0x1]] }
  0x7c   : > { %s2280_s11 = sld [smem:[#allocation9]]  ;;  %s2288_s29 = sld [smem:[#allocation9 + $0x4]] }
  0x7d   : > { %s2293_s30 = sld [smem:[#allocation9 + $0x5]]  ;;  %s2323_s16 = sld [smem:[#allocation9 + $0x104]] }
  0x7e   : > { %s2325_s26 = sld [smem:[#allocation9 + $0x105]]  ;;  %s2327_s14 = sld [smem:[#allocation9 + $0x106]] }
  0x7f   : > { %s2331_s13 = sld [smem:[#allocation9 + $0x107]]  ;;  %s2398_s17 = sld [smem:[#allocation9 + $0x183]] }
  0x80   : > { %s2400_s24 = sld [smem:[#allocation9 + $0x184]]  ;;  %p2632_p12 = scmp.ne.s32.totalorder %s2617_s23, 0 }
  0xdb   : > { %v264_v9 = vpop.permute.xlu0 %263  ;;  %v268_v10 = vpop.permute.xlu1 %267 }
  0xdc   : > { %288 = vst.msk [vmem:[#allocation2 + $0x1] sm:$0xff] %vm287_vm2, %v264_v9  ;;  %290 = vst.msk [vmem:[#allocation2 + $0x19] sm:$0xff] %vm287_vm2, %v268_v10 }
  0xdf   : > { %v266_v11 = vpop.permute.xlu0 %265  ;;  %v270_v12 = vpop.permute.xlu1 %269 }
  0xe0   : > { %289 = vst.msk [vmem:[#allocation2 + $0x9] sm:$0xff] %vm287_vm2, %v266_v11  ;;  %291 = vst.msk [vmem:[#allocation2 + $0x21] sm:$0xff] %vm287_vm2, %v270_v12 }
  0xe3   : > { %v1821_v14 = vld [vmem:[#allocation2] sm:$0xff]  ;;  %v274_v15 = vpop.permute.xlu1 %273  ;;  %v272_v16 = vpop.permute.xlu0 %271  ;;  %v1855_v28 = vld [vmem:[#allocation2 + $0x18] sm:$0xff] }
  0xe4   : > { %v307_v17 = vmul.f32 %v306_v13, %v1821_v14  ;;  %293 = vst.msk [vmem:[#allocation2 + $0x39] sm:$0xff] %vm287_vm2, %v274_v15  ;;  %292 = vst.msk [vmem:[#allocation2 + $0x31] sm:$0xff] %vm287_vm2, %v272_v16  ;;  %v321_v25 = vmul.f32 %v320_v18, %v1821_v14  ;;  %v464_v32 = vmul.f32 %v1855_v28, %v463_v21 }
  0xe5   : > { %v478_v37 = vmul.f32 %v1855_v28, %v477_v29  ;;  %v434_v59 = vmul.f32 %v1913_v47, %v1821_v14  ;;  %v353_v63 = vmul.f32 %v352_v38, %v1821_v14  ;;  %v374_v0 = vmul.f32 %v373_v41, %v1821_v14 }
  0xe6   : > { %311 = vrot.lane.b32.xlu0 %v307_v17, %s2599_s28  ;;  %v509_v1 = vmul.f32 %v1855_v28, %v508_v42  ;;  %v530_v5 = vmul.f32 %v1855_v28, %v529_v45 }
  0xe7   : > { %v1830_v19 = vld [vmem:[#allocation2 + $0x8] sm:$0xff]  ;;  %v1832_v20 = vld [vmem:[#allocation2 + $0x20] sm:$0xff]  ;;  %v278_v22 = vpop.permute.xlu1 %277  ;;  %v276_v23 = vpop.permute.xlu0 %275  ;;  %v1926_v53 = vld [vmem:[#allocation2 + $0x10] sm:$0x3]  ;;  %v440_v15 = vrot.slane %v434_v59, 2  ;;  %v359_v17 = vrot.slane %v353_v63, 1 }
  0xe8   : > { %v308_v24 = vmul.f32 %v306_v13, %v1830_v19  ;;  %295 = vst.msk [vmem:[#allocation2 + $0x51] sm:$0xff] %vm287_vm2, %v278_v22  ;;  %294 = vst.msk [vmem:[#allocation2 + $0x49] sm:$0xff] %vm287_vm2, %v276_v23  ;;  %v465_v26 = vmul.f32 %v1832_v20, %v463_v21  ;;  %v322_v27 = vmul.f32 %v320_v18, %v1830_v19  ;;  %v1942_v58 = vld [vmem:[#allocation2 + $0x28] sm:$0x3] }
  0xe9   : > { %v479_v33 = vmul.f32 %v1832_v20, %v477_v29  ;;  %v1924_v52 = vmul.f32 %v352_v38, %v1830_v19  ;;  %v355_v4 = vmul.f32 %v352_v38, %v1926_v53  ;;  %v1965_v6 = vmul.f32 %v1913_v47, %v1830_v19 }
  0xea   : > { %313 = vrot.lane.b32.xlu1 %v308_v24, %s2599_s28  ;;  %325 = vrot.lane.b32.xlu0 %v321_v25, %s2597_s20  ;;  %v375_v8 = vmul.f32 %v373_v41, %v1830_v19  ;;  %v510_v9 = vmul.f32 %v1832_v20, %v508_v42  ;;  %v511_v10 = vmul.f32 %v1942_v58, %v508_v42  ;;  %v380_v29 = vrot.slane %v374_v0, 1 }
  0xeb   : > { %v1868_v30 = vld [vmem:[#allocation2 + $0x38] sm:$0xff]  ;;  %v1892_v35 = vld [vmem:[#allocation2 + $0x30] sm:$0xff]  ;;  %v360_v7 = vrot.slane %v1924_v52, 1  ;;  %v1971_v11 = vld [vmem:[#allocation2 + $0x40] sm:$0x3]  ;;  %v441_v16 = vrot.slane %v1965_v6, 2  ;;  %v376_v18 = vmul.f32 %v373_v41, %v1926_v53  ;;  %v531_v21 = vmul.f32 %v1832_v20, %v529_v45 }
  0xec   : > { %v620_v34 = vmul.f32 %v1868_v30, %v618_v31  ;;  %v619_v39 = vmul.f32 %v1892_v35, %v618_v31  ;;  %v634_v40 = vmul.f32 %v1868_v30, %v632_v36  ;;  %v633_v3 = vmul.f32 %v1892_v35, %v632_v36 }
  0xed   : > { %v532_v22 = vmul.f32 %v1942_v58, %v529_v45  ;;  %v664_v23 = vmul.f32 %v1892_v35, %v663_v49  ;;  %v665_v24 = vmul.f32 %v1868_v30, %v663_v49  ;;  %v666_v25 = vmul.f32 %v1971_v11, %v663_v49 }
  0xee   : > { %327 = vrot.lane.b32.xlu1 %v322_v27, %s2597_s20  ;;  %470 = vrot.lane.b32.xlu0 %v465_v26, %s2599_s28  ;;  %s1881_s20 = sld [smem:[#allocation8 + $0x184]]  ;;  %s1883_s28 = sld [smem:[#allocation8 + $0x6]]  ;;  %v1991_v26 = vsel %vm401_vm3, %v440_v15, %v441_v16  ;;  %v362_v27 = vrot.slane %v355_v4, 1  ;;  %v515_v31 = vrot.slane %v509_v1, 1  ;;  %v516_v36 = vrot.slane %v510_v9, 1 }
  0xef   : > { %v1905_v43 = vld [vmem:[#allocation2 + $0x50] sm:$0xff]  ;;  %v1952_v62 = vld [vmem:[#allocation2 + $0x48] sm:$0xff]  ;;  %v537_v41 = vrot.slane %v531_v21, 1  ;;  %v539_v42 = vrot.slane %v532_v22, 1  ;;  %v671_v45 = vrot.slane %v665_v24, 1  ;;  %v673_v49 = vrot.slane %v666_v25, 1 }
  0xf0   : > { %v775_v57 = vmul.f32 %v1905_v43, %v773_v44  ;;  %v774_v12 = vmul.f32 %v1952_v62, %v773_v44  ;;  %v789_v13 = vmul.f32 %v1905_v43, %v787_v48  ;;  %v788_v38 = vmul.f32 %v1952_v62, %v787_v48  ;;  %v2031_v9 = vld [vmem:[#allocation2 + $0x58] sm:$0x3] }
  0xf1   : > { %v670_v44 = vrot.slane %v664_v23, 1  ;;  %v2002_v52 = vmul.f32 %v1892_v35, %v1918_v50  ;;  %v2010_v48 = vmul.f32 %v1971_v11, %v1918_v50  ;;  %v363_v63 = vsel %vm341_vm4, %v360_v7, %v362_v27 }
  0xf2   : > { %468 = vrot.lane.b32.xlu1 %v464_v32, %s2630_s0  ;;  %484 = vrot.lane.b32.xlu0 %v479_v33, %s2631_s27  ;;  %v1994_v32 = vstv %s1937_s4  ;;  %v361_v33 = vsel %vm341_vm4, %v359_v17, %v360_v7  ;;  %v801_v1 = vstv %s1978_s1  ;;  %v517_v4 = vsel %vm341_vm4, %v515_v31, %v516_v36  ;;  %s2297_s4 = sld [smem:[#allocation9 + $0x7]]  ;;  %s2299_s1 = sld [smem:[#allocation9 + $0x80]] }
  0xf3   : > { %v540_v7 = vsel %vm341_vm4, %v537_v41, %v539_v42  ;;  %v691_v15 = vrot.slane %v2002_v52, 1  ;;  %v335_v24 = vmul.f32 %v1932_v55, %v1821_v14  ;;  %v336_v25 = vmul.f32 %v1932_v55, %v1830_v19 }
  0xf4   : > { %v1929_v54 = vstv %s1881_s20  ;;  %v1935_v56 = vstv %s1883_s28  ;;  %v337_v27 = vmul.f32 %v1932_v55, %v1926_v53  ;;  %v493_v31 = vmul.f32 %v1832_v20, %v1947_v60  ;;  %s1286_s28 = sld [smem:[#allocation8 + $0x88]]  ;;  %s1297_s20 = sld [smem:[#allocation8 + $0x107]] }
  0xf5   : > { %v2014_v59 = vmul.f32 %v1952_v62, %v1929_v54  ;;  %v2021_v0 = vmul.f32 %v1905_v43, %v1929_v54  ;;  %v2048_v23 = vmul.f32 %v2031_v9, %v1929_v54  ;;  %v342_v54 = vrot.slane %v335_v24, 1 }
  0xf6   : > { %482 = vrot.lane.b32.xlu1 %v478_v37, %s2631_s27  ;;  %625 = vrot.lane.b32.xlu0 %v620_v34, %s2630_s0  ;;  %v381_v34 = vrot.slane %v375_v8, 1  ;;  %v518_v37 = vrot.slane %v511_v10, 1  ;;  %v499_v55 = vrot.slane %v493_v31, 1  ;;  %v803_v24 = vmul.f32 %v1905_v43, %v801_v1 }
  0xf7   : > { %v825_v21 = vrot.slane %v2014_v59, 1  ;;  %v826_v22 = vrot.slane %v2021_v0, 1  ;;  %v397_v31 = vmul.f32 %v1935_v56, %v1926_v53  ;;  %v413_v52 = vmul.f32 %v1910_v46, %v1821_v14 }
  0xf8   : > { %v570_v59 = vmul.f32 %v1942_v58, %v1921_v51 }
  0xfa   : > { %623 = vrot.lane.b32.xlu1 %v619_v39, %s2630_s0  ;;  %639 = vrot.lane.b32.xlu0 %v634_v40, %s2631_s27  ;;  %v383_v39 = vrot.slane %v376_v18, 1  ;;  %v536_v40 = vrot.slane %v530_v5, 1  ;;  %v519_v5 = vsel %vm341_vm4, %v516_v36, %v518_v37  ;;  %v694_v18 = vrot.slane %v2010_v48, 1 }
  0xfb   : > { %v647_v36 = vmul.f32 %v1892_v35, %v1958_v2  ;;  %v648_v37 = vmul.f32 %v1868_v30, %v1958_v2 }
  0xfc   : > { %v384_v8 = vsel %vm341_vm4, %v381_v34, %v383_v39  ;;  %v538_v10 = vsel %vm341_vm4, %v536_v40, %v537_v41 }
  0xfd   : > { %v654_v42 = vrot.slane %v648_v37, 1 }
  0xfe   : > { %637 = vrot.lane.b32.xlu1 %v633_v3, %s2631_s27  ;;  %780 = vrot.lane.b32.xlu0 %v775_v57, %s2630_s0  ;;  %v2006_v57 = vmul.f32 %v1868_v30, %v1918_v50  ;;  %v2025_v3 = vstv %s1980_s2  ;;  %v382_v50 = vsel %vm341_vm4, %v380_v29, %v381_v34  ;;  %v492_v29 = vmul.f32 %v1855_v28, %v1947_v60  ;;  %s2301_s2 = sld [smem:[#allocation9 + $0x81]] }
  0xff   : > { %v343_v34 = vrot.slane %v336_v25, 1  ;;  %v804_v25 = vmul.f32 %v2031_v9, %v801_v1 }
 0x100   : > { %v692_v17 = vrot.slane %v2006_v57, 1  ;;  %v498_v39 = vrot.slane %v492_v29, 1  ;;  %v396_v29 = vmul.f32 %v1935_v56, %v1830_v19 }
 0x101   : > { %v2069_v41 = vsel %vm341_vm4, %v342_v54, %v343_v34  ;;  %v809_v54 = vrot.slane %v803_v24, 1  ;;  %v861_v24 = vmul.f32 %v1952_v62, %v2025_v3 }
 0x102   : > { %778 = vrot.lane.b32.xlu1 %v774_v12, %s2630_s0  ;;  %794 = vrot.lane.b32.xlu0 %v789_v13, %s2631_s27  ;;  %v672_v12 = vsel %vm341_vm4, %v670_v44, %v671_v45  ;;  %v2037_v13 = vsel %vm341_vm4, %v671_v45, %v673_v49  ;;  %v649_v44 = vmul.f32 %v1971_v11, %v1958_v2  ;;  %v403_v37 = vrot.slane %v396_v29, 2 }
 0x103   : > { %v2077_v49 = vsel %vm341_vm4, %v498_v39, %v499_v55  ;;  %v552_v39 = vmul.f32 %v1832_v20, %v1950_v61 }
 0x106   : > { %792 = vrot.lane.b32.xlu1 %v788_v38, %s2631_s27  ;;  %364 = vrot.lane.b32.xlu0 %v361_v33, %s2630_s0  ;;  %v494_v33 = vmul.f32 %v1942_v58, %v1947_v60  ;;  %v345_v38 = vrot.slane %v337_v27, 1  ;;  %v653_v60 = vrot.slane %v647_v36, 1  ;;  %v395_v27 = vmul.f32 %v1935_v56, %v1821_v14 }
 0x108   : > { %v501_v40 = vrot.slane %v494_v33, 1  ;;  %v2074_v45 = vsel %vm341_vm4, %v343_v34, %v345_v38  ;;  %v811_v34 = vrot.slane %v804_v25, 1  ;;  %v402_v36 = vrot.slane %v395_v27, 2 }
 0x109   : > { %v405_v38 = vrot.slane %v397_v31, 2 }
 0x10a   : > { %366 = vrot.lane.b32.xlu1 %v363_v63, %s2630_s0  ;;  %385 = vrot.lane.b32.xlu0 %v382_v50, %s2631_s27  ;;  %v2080_v63 = vsel %vm341_vm4, %v499_v55, %v501_v40  ;;  %v802_v50 = vmul.f32 %v1952_v62, %v801_v1  ;;  %v551_v1 = vmul.f32 %v1855_v28, %v1950_v61 }
 0x10b   : > { %v553_v55 = vmul.f32 %v1942_v58, %v1950_v61  ;;  %v2112_v40 = vsel %vm401_vm3, %v402_v36, %v403_v37  ;;  %v707_v61 = vmul.f32 %v1868_v30, %v1994_v32 }
 0x10c   : > { %v808_v2 = vrot.slane %v802_v50, 1 }
 0x10d   : > { %v560_v50 = vrot.slane %v553_v55, 2  ;;  %v713_v29 = vrot.slane %v707_v61, 2  ;;  %v569_v55 = vmul.f32 %v1832_v20, %v1921_v51 }
 0x10e   : > { %520 = vrot.lane.b32.xlu1 %v517_v4, %s2630_s0  ;;  %522 = vrot.lane.b32.xlu0 %v519_v5, %s2630_s0  ;;  %v2084_v4 = vsel %vm341_vm4, %v653_v60, %v654_v42  ;;  %v656_v5 = vrot.slane %v649_v44, 1  ;;  %v2104_v56 = vsel %vm341_vm4, %v808_v2, %v809_v54  ;;  %v2115_v60 = vsel %vm401_vm3, %v403_v37, %v405_v38 }
 0x10f   : > { %v706_v44 = vmul.f32 %v1892_v35, %v1994_v32 }
 0x110   : > { %v2097_v33 = vsel %vm341_vm4, %v654_v42, %v656_v5  ;;  %v558_v42 = vrot.slane %v552_v39, 2  ;;  %v708_v5 = vmul.f32 %v1971_v11, %v1994_v32  ;;  %v693_v32 = vsel %vm341_vm4, %v691_v15, %v692_v17 }
 0x111   : > { %v712_v2 = vrot.slane %v706_v44, 2  ;;  %v415_v39 = vmul.f32 %v1910_v46, %v1926_v53  ;;  %v839_v44 = vstv %s2121_s5  ;;  %s2303_s5 = sld [smem:[#allocation9 + $0x82]] }
 0x112   : > { %387 = vrot.lane.b32.xlu1 %v384_v8, %s2631_s27  ;;  %541 = vrot.lane.b32.xlu0 %v538_v10, %s2631_s27  ;;  %v2107_v8 = vsel %vm341_vm4, %v809_v54, %v811_v34  ;;  %v557_v10 = vrot.slane %v551_v1, 2  ;;  %v2137_v27 = vsel %vm401_vm3, %v558_v42, %v560_v50  ;;  %v715_v31 = vrot.slane %v708_v5, 2 }
 0x113   : > { %v867_v54 = vrot.slane %v861_v24, 2  ;;  %v414_v34 = vmul.f32 %v1910_v46, %v1830_v19  ;;  %v419_v50 = vrot.slane %v413_v52, 2  ;;  %v422_v57 = vrot.slane %v415_v39, 2 }
 0x114   : > { %v2130_v25 = vsel %vm401_vm3, %v557_v10, %v558_v42  ;;  %v2153_v37 = vsel %vm401_vm3, %v713_v29, %v715_v31  ;;  %v568_v10 = vmul.f32 %v1855_v28, %v1921_v51  ;;  %v695_v42 = vsel %vm341_vm4, %v692_v17, %v694_v18 }
 0x115   : > { %v420_v46 = vrot.slane %v414_v34, 2  ;;  %v575_v17 = vrot.slane %v569_v55, 2  ;;  %v841_v5 = vmul.f32 %v1905_v43, %v839_v44  ;;  %v588_v24 = vstv %s1286_s28  ;;  %s2305_s28 = sld [smem:[#allocation9 + $0x83]] }
 0x116   : > { %543 = vrot.lane.b32.xlu1 %v540_v7, %s2631_s27  ;;  %675 = vrot.lane.b32.xlu0 %v672_v12, %s2630_s0  ;;  %v862_v7 = vmul.f32 %v1905_v43, %v2025_v3  ;;  %v863_v12 = vmul.f32 %v2031_v9, %v2025_v3  ;;  %v2150_v3 = vsel %vm401_vm3, %v712_v2, %v713_v29  ;;  %v574_v61 = vrot.slane %v568_v10, 2 }
 0x117   : > { %v421_v18 = vsel %vm401_vm3, %v419_v50, %v420_v46  ;;  %v423_v0 = vsel %vm401_vm3, %v420_v46, %v422_v57  ;;  %v577_v2 = vrot.slane %v570_v59, 2  ;;  %v842_v29 = vmul.f32 %v2031_v9, %v839_v44 }
 0x118   : > { %v868_v1 = vrot.slane %v862_v7, 2  ;;  %v870_v36 = vrot.slane %v863_v12, 2  ;;  %v847_v12 = vrot.slane %v841_v5, 1  ;;  %v436_v51 = vmul.f32 %v1913_v47, %v1926_v53 }
 0x119   : > { %v589_v31 = vmul.f32 %v1855_v28, %v588_v24  ;;  %v591_v10 = vmul.f32 %v1942_v58, %v588_v24 }
 0x11a   : > { %677 = vrot.lane.b32.xlu1 %v2037_v13, %s2630_s0  ;;  %696 = vrot.lane.b32.xlu0 %v693_v32, %s2631_s27  ;;  %v2158_v15 = vsel %vm401_vm3, %v867_v54, %v868_v1  ;;  %v2161_v38 = vsel %vm401_vm3, %v868_v1, %v870_v36  ;;  %v828_v13 = vrot.slane %v2048_v23, 1  ;;  %v827_v23 = vsel %vm341_vm4, %v825_v21, %v826_v22 }
 0x11b   : > { %v840_v21 = vmul.f32 %v1952_v62, %v839_v44  ;;  %v590_v54 = vmul.f32 %v1832_v20, %v588_v24  ;;  %v578_v32 = vsel %vm401_vm3, %v575_v17, %v577_v2  ;;  %v849_v1 = vrot.slane %v842_v29, 1 }
 0x11c   : > { %v829_v48 = vsel %vm341_vm4, %v826_v22, %v828_v13  ;;  %v576_v22 = vsel %vm401_vm3, %v574_v61, %v575_v17  ;;  %v722_v36 = vstv %s1297_s20  ;;  %v443_v52 = vrot.slane %v436_v51, 2  ;;  %s2307_s20 = sld [smem:[#allocation9 + $0x84]] }
 0x11d   : > { %v846_v7 = vrot.slane %v840_v21, 1  ;;  %v595_v13 = vrot.slane %v589_v31, 2  ;;  %v596_v39 = vrot.slane %v590_v54, 2  ;;  %v850_v47 = vsel %vm341_vm4, %v847_v12, %v849_v1 }
 0x11e   : > { %698 = vrot.lane.b32.xlu1 %v695_v42, %s2631_s27  ;;  %830 = vrot.lane.b32.xlu0 %v827_v23, %s2630_s0  ;;  %v723_v53 = vmul.f32 %v1892_v35, %v722_v36  ;;  %v724_v55 = vmul.f32 %v1868_v30, %v722_v36  ;;  %v743_v42 = vstv %s1298_s18  ;;  %v877_v23 = vstv %s1309_s19  ;;  %s2309_s18 = sld [smem:[#allocation9 + $0x85]]  ;;  %s2311_s19 = sld [smem:[#allocation9 + $0x86]] }
 0x11f   : > { %v848_v34 = vsel %vm341_vm4, %v846_v7, %v847_v12  ;;  %v444_v46 = vsel %vm401_vm3, %v441_v16, %v443_v52  ;;  %v597_v58 = vsel %vm401_vm3, %v595_v13, %v596_v39  ;;  %v598_v44 = vrot.slane %v591_v10, 2 }
 0x120   : > { %v725_v50 = vmul.f32 %v1971_v11, %v722_v36  ;;  %v730_v57 = vrot.slane %v724_v55, 2  ;;  %v744_v61 = vmul.f32 %v1892_v35, %v743_v42  ;;  %v745_v17 = vmul.f32 %v1868_v30, %v743_v42 }
 0x121   : > { %v746_v16 = vmul.f32 %v1971_v11, %v743_v42  ;;  %v880_v12 = vmul.f32 %v2031_v9, %v877_v23 }
 0x122   : > { %832 = vrot.lane.b32.xlu1 %v829_v48, %s2630_s0  ;;  %424 = vrot.lane.b32.xlu0 %v421_v18, %s2630_s0  ;;  %v729_v48 = vrot.slane %v723_v53, 2  ;;  %v732_v6 = vrot.slane %v725_v50, 2  ;;  %v878_v18 = vmul.f32 %v1952_v62, %v877_v23  ;;  %v750_v21 = vrot.slane %v744_v61, 2 }
 0x123   : > { %v751_v5 = vrot.slane %v745_v17, 2  ;;  %v753_v2 = vrot.slane %v746_v16, 2  ;;  %v302_v53 = vstv %s301_s7  ;;  %s2315_s7 = sld [smem:[#allocation9 + $0x100]] }
 0x124   : > { %v731_v59 = vsel %vm401_vm3, %v729_v48, %v730_v57  ;;  %v733_v24 = vsel %vm401_vm3, %v730_v57, %v732_v6  ;;  %v884_v7 = vrot.slane %v878_v18, 2 }
 0x125   : > { %v752_v11 = vsel %vm401_vm3, %v750_v21, %v751_v5  ;;  %v754_v54 = vsel %vm401_vm3, %v751_v5, %v753_v2  ;;  %v614_v21 = vstv %s1290_s10  ;;  %s2319_s10 = sld [smem:[#allocation9 + $0x102]] }
 0x126   : > { %426 = vrot.lane.b32.xlu1 %v423_v0, %s2630_s0  ;;  %579 = vrot.lane.b32.xlu0 %v576_v22, %s2630_s0  ;;  %v879_v0 = vmul.f32 %v1905_v43, %v877_v23  ;;  %v898_v22 = vstv %s1310_s6  ;;  %v304_v23 = vmul.f32 %v302_v53, %v1830_v19  ;;  %s2313_s6 = sld [smem:[#allocation9 + $0x87]] }
 0x127   : > { %v899_v51 = vmul.f32 %v1952_v62, %v898_v22  ;;  %v900_v31 = vmul.f32 %v1905_v43, %v898_v22  ;;  %v901_v52 = vmul.f32 %v2031_v9, %v898_v22  ;;  %v303_v9 = vmul.f32 %v302_v53, %v1821_v14 }
 0x128   : > { %v885_v29 = vrot.slane %v879_v0, 2  ;;  %v616_v22 = vmul.f32 %v1868_v30, %v614_v21 }
 0x129   : > { %v905_v1 = vrot.slane %v899_v51, 2  ;;  %v906_v36 = vrot.slane %v900_v31, 2  ;;  %v908_v10 = vrot.slane %v901_v52, 2 }
 0x12a   : > { %581 = vrot.lane.b32.xlu1 %v578_v32, %s2630_s0  ;;  %851 = vrot.lane.b32.xlu0 %v848_v34, %s2631_s27  ;;  %v887_v32 = vrot.slane %v880_v12, 2  ;;  %v886_v34 = vsel %vm401_vm3, %v884_v7, %v885_v29 }
 0x12c   : > { %v888_v13 = vsel %vm401_vm3, %v885_v29, %v887_v32  ;;  %v615_v29 = vmul.f32 %v1892_v35, %v614_v21 }
 0x12e   : > { %853 = vrot.lane.b32.xlu1 %v850_v47, %s2631_s27  ;;  %445 = vrot.lane.b32.xlu0 %v1991_v26, %s2631_s27  ;;  %v599_v26 = vsel %vm401_vm3, %v596_v39, %v598_v44  ;;  %v907_v39 = vsel %vm401_vm3, %v905_v1, %v906_v36  ;;  %v909_v47 = vsel %vm401_vm3, %v906_v36, %v908_v10  ;;  %v459_v44 = vstv %s1278_s9  ;;  %s2317_s9 = sld [smem:[#allocation9 + $0x101]] }
 0x12f   : > { %v461_v57 = vmul.f32 %v1832_v20, %v459_v44  ;;  %v460_v19 = vmul.f32 %v1855_v28, %v459_v44 }
 0x132   : > { %447 = vrot.lane.b32.xlu1 %v444_v46, %s2631_s27  ;;  %600 = vrot.lane.b32.xlu0 %v597_v58, %s2631_s27 }
 0x136   : > { %602 = vrot.lane.b32.xlu1 %v599_v26, %s2631_s27  ;;  %734 = vrot.lane.b32.xlu0 %v731_v59, %s2630_s0 }
 0x13a   : > { %736 = vrot.lane.b32.xlu1 %v733_v24, %s2630_s0  ;;  %755 = vrot.lane.b32.xlu0 %v752_v11, %s2631_s27 }
 0x13e   : > { %757 = vrot.lane.b32.xlu1 %v754_v54, %s2631_s27  ;;  %889 = vrot.lane.b32.xlu0 %v886_v34, %s2630_s0 }
 0x142   : > { %891 = vrot.lane.b32.xlu1 %v888_v13, %s2630_s0  ;;  %910 = vrot.lane.b32.xlu0 %v907_v39, %s2631_s27  ;;  %s1302_s0 = sld [smem:[#allocation8 + $0x180]] }
 0x146   : > { %912 = vrot.lane.b32.xlu1 %v909_v47, %s2631_s27  ;;  %s2295_s27 = sld [smem:[#allocation9 + $0x6]] }
 0x148   : > { %v769_v31 = vstv %s1302_s0  ;;  %s2321_s0 = sld [smem:[#allocation9 + $0x103]] }
 0x158   : > { %v312_v55 = vpop.permute.xlu0 %311 }
 0x159   : > { %v317_v42 = vadd.f32 %v312_v55, %v303_v9 }
 0x15c   : > { %v314_v46 = vpop.permute.xlu1 %313  ;;  %v326_v58 = vpop.permute.xlu0 %325 }
 0x15d   : > { %v318_v50 = vadd.f32 %v314_v46, %v304_v23  ;;  %v331_v48 = vadd.f32 %v326_v58, %v317_v42 }
 0x15f   : > { %v349_v61 = vadd.f32 %v2069_v41, %v331_v48 }
 0x160   : > { %v328_v17 = vpop.permute.xlu1 %327  ;;  %v471_v26 = vpop.permute.xlu0 %470 }
 0x161   : > { %v332_v6 = vadd.f32 %v328_v17, %v318_v50  ;;  %v475_v16 = vadd.f32 %v471_v26, %v461_v57 }
 0x163   : > { %v350_v14 = vadd.f32 %v2074_v45, %v332_v6 }
 0x164   : > { %v469_v18 = vpop.permute.xlu1 %468  ;;  %v485_v59 = vpop.permute.xlu0 %484 }
 0x165   : > { %v489_v5 = vadd.f32 %v485_v59, %v475_v16  ;;  %v474_v0 = vadd.f32 %v469_v18, %v460_v19 }
 0x167   : > { %v506_v20 = vadd.f32 %v2080_v63, %v489_v5  ;;  %v771_v63 = vmul.f32 %v1905_v43, %v769_v31 }
 0x168   : > { %v483_v24 = vpop.permute.xlu1 %482  ;;  %v626_v41 = vpop.permute.xlu0 %625 }
 0x169   : > { %v488_v2 = vadd.f32 %v483_v24, %v474_v0  ;;  %v630_v7 = vadd.f32 %v626_v41, %v616_v22 }
 0x16b   : > { %v505_v12 = vadd.f32 %v2077_v49, %v488_v2  ;;  %v770_v49 = vmul.f32 %v1952_v62, %v769_v31  ;;  %v1044_v31 = vstv %s2293_s30  ;;  %s2448_s30 = sld [smem:[#allocation9 + $0x187]] }
 0x16c   : > { %v624_v11 = vpop.permute.xlu1 %623  ;;  %v640_v45 = vpop.permute.xlu0 %639 }
 0x16d   : > { %v644_v51 = vadd.f32 %v640_v45, %v630_v7  ;;  %v629_v28 = vadd.f32 %v624_v11, %v615_v29  ;;  %v944_v11 = vstv %s2282_s22  ;;  %v969_v45 = vstv %s2284_s21  ;;  %s2394_s22 = sld [smem:[#allocation9 + $0x181]]  ;;  %s2396_s21 = sld [smem:[#allocation9 + $0x182]] }
 0x16e   : > { %v994_v29 = vstv %s2286_s25  ;;  %s2436_s25 = sld [smem:[#allocation9 + $0x185]] }
 0x16f   : > { %v661_v54 = vadd.f32 %v2097_v33, %v644_v51  ;;  %v1019_v51 = vstv %s2288_s29  ;;  %s2446_s29 = sld [smem:[#allocation9 + $0x186]] }
 0x170   : > { %v638_v32 = vpop.permute.xlu1 %637  ;;  %v781_v34 = vpop.permute.xlu0 %780 }
 0x171   : > { %v643_v30 = vadd.f32 %v638_v32, %v629_v28  ;;  %v785_v1 = vadd.f32 %v781_v34, %v771_v63  ;;  %v1094_v32 = vstv %s2297_s4 }
 0x173   : > { %v660_v36 = vadd.f32 %v2084_v4, %v643_v30 }
 0x174   : > { %v779_v52 = vpop.permute.xlu1 %778  ;;  %v795_v13 = vpop.permute.xlu0 %794 }
 0x175   : > { %v799_v39 = vadd.f32 %v795_v13, %v785_v1  ;;  %v784_v10 = vadd.f32 %v779_v52, %v770_v49  ;;  %v948_v52 = vstv %s2301_s2  ;;  %v973_v13 = vstv %s2303_s5 }
 0x177   : > { %v2262_v35 = vadd.f32 %v2107_v8, %v799_v39  ;;  %v998_v39 = vstv %s2305_s28 }
 0x178   : > { %v793_v47 = vpop.permute.xlu1 %792  ;;  %v365_v53 = vpop.permute.xlu0 %364 }
 0x179   : > { %v798_v33 = vadd.f32 %v793_v47, %v784_v10  ;;  %v370_v9 = vadd.f32 %v365_v53, %v349_v61  ;;  %v1023_v10 = vstv %s2307_s20  ;;  %v1098_v53 = vstv %s2313_s6 }
 0x17b   : > { %v815_v55 = vadd.f32 %v2104_v56, %v798_v33  ;;  %v929_v33 = vstv %s2315_s7 }
 0x17c   : > { %v367_v42 = vpop.permute.xlu1 %366  ;;  %v386_v43 = vpop.permute.xlu0 %385 }
 0x17d   : > { %v391_v23 = vadd.f32 %v386_v43, %v370_v9  ;;  %v371_v62 = vadd.f32 %v367_v42, %v350_v14  ;;  %v954_v42 = vstv %s2317_s9  ;;  %v979_v43 = vstv %s2319_s10 }
 0x17f   : > { %v2266_v4 = vadd.f32 %v2112_v40, %v391_v23 }
 0x180   : > { %v521_v46 = vpop.permute.xlu1 %520  ;;  %v523_v58 = vpop.permute.xlu0 %522 }
 0x181   : > { %v526_v44 = vadd.f32 %v521_v46, %v505_v12  ;;  %v527_v17 = vadd.f32 %v523_v58, %v506_v20  ;;  %v919_v12 = vstv %s2280_s11  ;;  %v1004_v46 = vstv %s2321_s0  ;;  %s2392_s11 = sld [smem:[#allocation9 + $0x180]] }
 0x182   : > { %v1029_v58 = vstv %s2323_s16  ;;  %s1362_s16 = sshll.u32 %s1594_s15, 11 }
 0x184   : > { %v388_v50 = vpop.permute.xlu1 %387  ;;  %v542_v48 = vpop.permute.xlu0 %541 }
 0x185   : > { %v392_v8 = vadd.f32 %v388_v50, %v371_v62  ;;  %v547_v57 = vadd.f32 %v542_v48, %v526_v44  ;;  %v1054_v62 = vstv %s2325_s26  ;;  %v1079_v44 = vstv %s2327_s14 }
 0x187   : > { %v2269_v26 = vadd.f32 %v2115_v60, %v392_v8  ;;  %v2272_v56 = vadd.f32 %v2130_v25, %v547_v57  ;;  %v1104_v8 = vstv %s2331_s13  ;;  %s1266_s13 = sshll.u32 %s1787_s8, 7 }
 0x188   : > { %v544_v61 = vpop.permute.xlu1 %543  ;;  %v676_v6 = vpop.permute.xlu0 %675  ;;  %s2489_s14 = scalar_lea.vmem [#allocation10], %s1266_s13 }
 0x189   : > { %v548_v16 = vadd.f32 %v544_v61, %v527_v17  ;;  %v681_v40 = vadd.f32 %v676_v6, %v660_v36  ;;  %v923_v36 = vstv %s2299_s1  ;;  %s1134_s26 = sshll.u32 %s2489_s14, 4  ;;  %s1613_s1 = smov [#allocation10]   ;;  %s2524_s26 = int_to_ptr.vmem [resolvable:$true] %s1134_s26 }
 0x18a   : > { %s1512_s4 = scalar_lea.vmem %s2524_s26, 2048  ;;  %s1516_s2 = sshll.u32 %s1613_s1, 4  ;;  %s1517_s2 = int_to_ptr.vmem [resolvable:$false] %s1516_s2 }
 0x18b   : > { %v2275_v18 = vadd.f32 %v2137_v27, %v548_v16  ;;  %p1513_p13 = scmp.ne.s32.totalorder %s2524_s26, %s1512_s4  ;;  %s1518_s5 = scalar_lea.vmem %s1517_s2, 4096 }
 0x18c   : > { %v678_v14 = vpop.permute.xlu1 %677  ;;  %v697_v59 = vpop.permute.xlu0 %696  ;;  %p1519_p10 = scmp.lt.s32.totalorder %s2524_s26, %s1517_s2  ;;  %p1520_p11 = scmp.lt.s32.totalorder %s1518_s5, %s1512_s4 }
 0x18d   : > { %v702_v21 = vadd.f32 %v697_v59, %v681_v40  ;;  %v682_v19 = vadd.f32 %v678_v14, %v661_v54  ;;  %v1069_v54 = vstv %s2295_s27  ;;  %s1119_s27 = scalar_lea.sflag [#allocation5], %s1787_s8  ;;  %p1514_p0 = pnand %p1513_p13, %p2632_p12 }
 0x18e   : > { %p1521_p3 = por %p1520_p11, %p1519_p10 }
 0x18f   : > { %v2278_v5 = vadd.f32 %v2150_v3, %v702_v21  ;;  %p1515_p5 = pneg %p1514_p0 }
 0x190   : > { %v699_v0 = vpop.permute.xlu1 %698  ;;  %v831_v60 = vpop.permute.xlu0 %830 }
 0x191   : > { %v703_v22 = vadd.f32 %v699_v0, %v682_v19  ;;  %v836_v24 = vadd.f32 %v831_v60, %v815_v55  ;;  %p1522_p7 = pnand %p1521_p3, %p1515_p5 }
 0x193   : > { %v2291_v25 = vadd.f32 %v2153_v37, %v703_v22 }
 0x194   : > { %v833_v27 = vpop.permute.xlu1 %832  ;;  %v425_v20 = vpop.permute.xlu0 %424 }
 0x195   : > { %v837_v28 = vadd.f32 %v833_v27, %v2262_v35  ;;  %v430_v30 = vadd.f32 %v425_v20, %v2266_v4  ;;  %v1048_v35 = vstv %s2309_s18 }
 0x198   : > { %v427_v3 = vpop.permute.xlu1 %426  ;;  %v580_v37 = vpop.permute.xlu0 %579 }
 0x199   : > { %v431_v9 = vadd.f32 %v427_v3, %v2269_v26  ;;  %v585_v55 = vadd.f32 %v580_v37, %v2272_v56 }
 0x19c   : > { %v582_v41 = vpop.permute.xlu1 %581  ;;  %v852_v2 = vpop.permute.xlu0 %851 }
 0x19d   : > { %v857_v7 = vadd.f32 %v852_v2, %v836_v24  ;;  %v586_v17 = vadd.f32 %v582_v41, %v2275_v18 }
 0x19f   : > { %v2341_v34 = vadd.f32 %v2158_v15, %v857_v7  ;;  %v1073_v15 = vstv %s2311_s19 }
 0x1a0   : > { %v854_v63 = vpop.permute.xlu1 %853  ;;  %v446_v1 = vpop.permute.xlu0 %445 }
 0x1a1   : > { %v858_v49 = vadd.f32 %v854_v63, %v837_v28  ;;  %v451_v47 = vadd.f32 %v446_v1, %v430_v30 }
 0x1a3   : > { %v2363_v57 = vadd.f32 %v2161_v38, %v858_v49  ;;  %v920_v26 = vmul.f32 %v919_v12, %v451_v47  ;;  %v945_v56 = vmul.f32 %v944_v11, %v451_v47  ;;  %v970_v61 = vmul.f32 %v969_v45, %v451_v47 }
 0x1a4   : > { %v448_v23 = vpop.permute.xlu1 %447  ;;  %v601_v4 = vpop.permute.xlu0 %600  ;;  %v995_v6 = vmul.f32 %v994_v29, %v451_v47  ;;  %v1020_v16 = vmul.f32 %v1019_v51, %v451_v47  ;;  %v1045_v40 = vmul.f32 %v1044_v31, %v451_v47  ;;  %v1070_v38 = vmul.f32 %v1069_v54, %v451_v47 }
 0x1a5   : > { %v452_v50 = vadd.f32 %v448_v23, %v431_v9  ;;  %v606_v48 = vadd.f32 %v601_v4, %v585_v55  ;;  %v1095_v14 = vmul.f32 %v1094_v32, %v451_v47 }
 0x1a7   : > { %v921_v18 = vmul.f32 %v919_v12, %v452_v50  ;;  %v946_v59 = vmul.f32 %v944_v11, %v452_v50  ;;  %v971_v21 = vmul.f32 %v969_v45, %v452_v50  ;;  %v924_v60 = vmul.f32 %v923_v36, %v606_v48 }
 0x1a8   : > { %v603_v19 = vpop.permute.xlu1 %602  ;;  %v735_v0 = vpop.permute.xlu0 %734  ;;  %v949_v22 = vmul.f32 %v948_v52, %v606_v48  ;;  %v974_v27 = vmul.f32 %v973_v13, %v606_v48  ;;  %v999_v20 = vmul.f32 %v998_v39, %v606_v48  ;;  %v1024_v3 = vmul.f32 %v1023_v10, %v606_v48 }
 0x1a9   : > { %v1049_v37 = vmul.f32 %v1048_v35, %v606_v48  ;;  %v1074_v24 = vmul.f32 %v1073_v15, %v606_v48  ;;  %v1099_v41 = vmul.f32 %v1098_v53, %v606_v48  ;;  %v926_v2 = vadd.f32 %v924_v60, %v920_v26 }
 0x1aa   : > { %v951_v7 = vadd.f32 %v949_v22, %v945_v56  ;;  %v976_v12 = vadd.f32 %v974_v27, %v970_v61  ;;  %v1001_v11 = vadd.f32 %v999_v20, %v995_v6  ;;  %v1026_v45 = vadd.f32 %v1024_v3, %v1020_v16 }
 0x1ab   : > { %v1051_v28 = vadd.f32 %v1049_v37, %v1045_v40  ;;  %v1076_v30 = vadd.f32 %v1074_v24, %v1070_v38  ;;  %v1101_v63 = vadd.f32 %v1099_v41, %v1095_v14  ;;  %v996_v47 = vmul.f32 %v994_v29, %v452_v50 }
 0x1ac   : > { %v737_v1 = vpop.permute.xlu1 %736  ;;  %v756_v49 = vpop.permute.xlu0 %755  ;;  %v1021_v9 = vmul.f32 %v1019_v51, %v452_v50  ;;  %v1046_v55 = vmul.f32 %v1044_v31, %v452_v50  ;;  %v607_v23 = vadd.f32 %v603_v19, %v586_v17  ;;  %v1071_v4 = vmul.f32 %v1069_v54, %v452_v50 }
 0x1ad   : > { %v1096_v48 = vmul.f32 %v1094_v32, %v452_v50  ;;  %v740_v26 = vadd.f32 %v735_v0, %v2278_v5  ;;  %v741_v56 = vadd.f32 %v737_v1, %v2291_v25  ;;  %v960_v40 = vstv %s2394_s22 }
 0x1ae   : > { %v925_v61 = vmul.f32 %v923_v36, %v607_v23  ;;  %v950_v6 = vmul.f32 %v948_v52, %v607_v23  ;;  %v975_v16 = vmul.f32 %v973_v13, %v607_v23  ;;  %v1000_v29 = vmul.f32 %v998_v39, %v607_v23 }
 0x1af   : > { %v1025_v51 = vmul.f32 %v1023_v10, %v607_v23  ;;  %v1050_v31 = vmul.f32 %v1048_v35, %v607_v23  ;;  %v1075_v54 = vmul.f32 %v1073_v15, %v607_v23  ;;  %v1100_v5 = vmul.f32 %v1098_v53, %v607_v23 }
 0x1b0   : > { %v927_v25 = vadd.f32 %v925_v61, %v921_v18  ;;  %v952_v32 = vadd.f32 %v950_v6, %v946_v59  ;;  %v977_v36 = vadd.f32 %v975_v16, %v971_v21  ;;  %v1002_v52 = vadd.f32 %v1000_v29, %v996_v47  ;;  %v758_v13 = vpop.permute.xlu1 %757  ;;  %v890_v39 = vpop.permute.xlu0 %889 }
 0x1b1   : > { %v1027_v10 = vadd.f32 %v1025_v51, %v1021_v9  ;;  %v1052_v50 = vadd.f32 %v1050_v31, %v1046_v55  ;;  %v1077_v35 = vadd.f32 %v1075_v54, %v1071_v4  ;;  %v1102_v17 = vadd.f32 %v1100_v5, %v1096_v48 }
 0x1b2   : > { %v761_v15 = vadd.f32 %v756_v49, %v740_v26  ;;  %v935_v53 = vstv %s2392_s11  ;;  %v985_v38 = vstv %s2396_s21  ;;  %v762_v14 = vadd.f32 %v758_v13, %v741_v56 }
 0x1b3   : > { %v895_v18 = vadd.f32 %v890_v39, %v2341_v34  ;;  %v1010_v59 = vstv %s2398_s17  ;;  %v1035_v21 = vstv %s2400_s24  ;;  %v1085_v61 = vstv %s2446_s29  ;;  %s2522_s24 = scalar_lea.hbm %s2592_s3, %s1362_s16 }
 0x1b4   : > { %v930_v19 = vmul.f32 %v929_v33, %v761_v15  ;;  %v955_v0 = vmul.f32 %v954_v42, %v761_v15  ;;  %v980_v60 = vmul.f32 %v979_v43, %v761_v15  ;;  %v1005_v22 = vmul.f32 %v1004_v46, %v761_v15 }
 0x1b5   : > { %v1030_v34 = vmul.f32 %v1029_v58, %v761_v15  ;;  %v1055_v27 = vmul.f32 %v1054_v62, %v761_v15  ;;  %v1080_v20 = vmul.f32 %v1079_v44, %v761_v15  ;;  %v1105_v3 = vmul.f32 %v1104_v8, %v761_v15 }
 0x1b6   : > { %v932_v37 = vadd.f32 %v930_v19, %v926_v2  ;;  %v957_v24 = vadd.f32 %v955_v0, %v951_v7  ;;  %v982_v41 = vadd.f32 %v980_v60, %v976_v12  ;;  %v1007_v1 = vadd.f32 %v1005_v22, %v1001_v11  ;;  %v892_v11 = vpop.permute.xlu1 %891 }
 0x1b7   : > { %v1032_v49 = vadd.f32 %v1030_v34, %v1026_v45  ;;  %v1057_v47 = vadd.f32 %v1055_v27, %v1051_v28  ;;  %v1082_v9 = vadd.f32 %v1080_v20, %v1076_v30  ;;  %v1107_v55 = vadd.f32 %v1105_v3, %v1101_v63 }
 0x1b8   : > { %v931_v23 = vmul.f32 %v929_v33, %v762_v14  ;;  %v956_v4 = vmul.f32 %v954_v42, %v762_v14  ;;  %v981_v48 = vmul.f32 %v979_v43, %v762_v14  ;;  %v1006_v26 = vmul.f32 %v1004_v46, %v762_v14  ;;  %v911_v33 = vpop.permute.xlu0 %910 }
 0x1b9   : > { %v1031_v56 = vmul.f32 %v1029_v58, %v762_v14  ;;  %v1056_v2 = vmul.f32 %v1054_v62, %v762_v14  ;;  %v1081_v7 = vmul.f32 %v1079_v44, %v762_v14  ;;  %v1106_v12 = vmul.f32 %v1104_v8, %v762_v14 }
 0x1ba   : > { %v933_v42 = vadd.f32 %v931_v23, %v927_v25  ;;  %v958_v43 = vadd.f32 %v956_v4, %v952_v32  ;;  %v983_v45 = vadd.f32 %v981_v48, %v977_v36  ;;  %v1008_v46 = vadd.f32 %v1006_v26, %v1002_v52  ;;  %v913_v36 = vpop.permute.xlu1 %912 }
 0x1bb   : > { %v1033_v58 = vadd.f32 %v1031_v56, %v1027_v10  ;;  %v1058_v28 = vadd.f32 %v1056_v2, %v1052_v50  ;;  %v1083_v30 = vadd.f32 %v1081_v7, %v1077_v35  ;;  %v1108_v62 = vadd.f32 %v1106_v12, %v1102_v17 }
 0x1bc   : > { %v1060_v63 = vstv %s2436_s25  ;;  %v1110_v44 = vstv %s2448_s30  ;;  %v916_v8 = vadd.f32 %v911_v33, %v895_v18  ;;  %v896_v6 = vadd.f32 %v892_v11, %v2363_v57 }
 0x1be   : > { %v936_v16 = vmul.f32 %v935_v53, %v916_v8  ;;  %v961_v29 = vmul.f32 %v960_v40, %v916_v8  ;;  %v986_v51 = vmul.f32 %v985_v38, %v916_v8  ;;  %v1011_v31 = vmul.f32 %v1010_v59, %v916_v8 }
 0x1bf   : > { %v1036_v54 = vmul.f32 %v1035_v21, %v916_v8  ;;  %v1061_v5 = vmul.f32 %v1060_v63, %v916_v8  ;;  %v1086_v25 = vmul.f32 %v1085_v61, %v916_v8  ;;  %v1111_v32 = vmul.f32 %v1110_v44, %v916_v8 }
 0x1c0   : > { %v938_v52 = vadd.f32 %v936_v16, %v932_v37  ;;  %v963_v13 = vadd.f32 %v961_v29, %v957_v24  ;;  %v988_v39 = vadd.f32 %v986_v51, %v982_v41  ;;  %v1013_v57 = vadd.f32 %v1011_v31, %v1007_v1 }
 0x1c1   : > { %v1038_v10 = vadd.f32 %v1036_v54, %v1032_v49  ;;  %v1063_v50 = vadd.f32 %v1061_v5, %v1057_v47  ;;  %v1088_v35 = vadd.f32 %v1086_v25, %v1082_v9  ;;  %v1113_v17 = vadd.f32 %v1111_v32, %v1107_v55 }
 0x1c2   : > { %941 = vst.msk [vmem:[%s2489_s14] sm:$0xff] %vm940_vm5, %v938_v52  ;;  %1318 = vst.msk [vmem:[%s2489_s14 + $0x10] sm:$0xff] %vm940_vm5, %v963_v13  ;;  %v917_v15 = vadd.f32 %v913_v36, %v896_v6 }
 0x1c3   : > { %1324 = vst.msk [vmem:[%s2489_s14 + $0x20] sm:$0xff] %vm940_vm5, %v988_v39  ;;  %1330 = vst.msk [vmem:[%s2489_s14 + $0x30] sm:$0xff] %vm940_vm5, %v1013_v57 }
 0x1c4   : > { %1336 = vst.msk [vmem:[%s2489_s14 + $0x40] sm:$0xff] %vm940_vm5, %v1038_v10  ;;  %1342 = vst.msk [vmem:[%s2489_s14 + $0x50] sm:$0xff] %vm940_vm5, %v1063_v50  ;;  %v937_v14 = vmul.f32 %v935_v53, %v917_v15  ;;  %v962_v18 = vmul.f32 %v960_v40, %v917_v15  ;;  %v987_v19 = vmul.f32 %v985_v38, %v917_v15 }
 0x1c5   : > { %1348 = vst.msk [vmem:[%s2489_s14 + $0x60] sm:$0xff] %vm940_vm5, %v1088_v35  ;;  %1354 = vst.msk [vmem:[%s2489_s14 + $0x70] sm:$0xff] %vm940_vm5, %v1113_v17  ;;  %v1012_v0 = vmul.f32 %v1010_v59, %v917_v15  ;;  %v1037_v60 = vmul.f32 %v1035_v21, %v917_v15  ;;  %v1062_v22 = vmul.f32 %v1060_v63, %v917_v15 }
 0x1c6   : > { %v1087_v34 = vmul.f32 %v1085_v61, %v917_v15  ;;  %v1112_v27 = vmul.f32 %v1110_v44, %v917_v15  ;;  %v939_v20 = vadd.f32 %v937_v14, %v933_v42  ;;  %v964_v53 = vadd.f32 %v962_v18, %v958_v43 }
 0x1c7   : > { %v989_v40 = vadd.f32 %v987_v19, %v983_v45  ;;  %v1014_v38 = vadd.f32 %v1012_v0, %v1008_v46  ;;  %v1039_v59 = vadd.f32 %v1037_v60, %v1033_v58  ;;  %v1064_v21 = vadd.f32 %v1062_v22, %v1058_v28 }
 0x1c8   : > { %v1089_v3 = vadd.f32 %v1087_v34, %v1083_v30  ;;  %v1114_v37 = vadd.f32 %v1112_v27, %v1108_v62  ;;  %942 = vst.msk [vmem:[%s2489_s14 + $0x8] sm:$0xff] %vm940_vm5, %v939_v20  ;;  %1319 = vst.msk [vmem:[%s2489_s14 + $0x18] sm:$0xff] %vm940_vm5, %v964_v53 }
 0x1c9   : > { %1325 = vst.msk [vmem:[%s2489_s14 + $0x28] sm:$0xff] %vm940_vm5, %v989_v40  ;;  %1331 = vst.msk [vmem:[%s2489_s14 + $0x38] sm:$0xff] %vm940_vm5, %v1014_v38 }
 0x1ca   : > { %1337 = vst.msk [vmem:[%s2489_s14 + $0x48] sm:$0xff] %vm940_vm5, %v1039_v59  ;;  %1343 = vst.msk [vmem:[%s2489_s14 + $0x58] sm:$0xff] %vm940_vm5, %v1064_v21 }
 0x1cb   : > { %1349 = vst.msk [vmem:[%s2489_s14 + $0x68] sm:$0xff] %vm940_vm5, %v1089_v3  ;;  %1355 = vst.msk [vmem:[%s2489_s14 + $0x78] sm:$0xff] %vm940_vm5, %v1114_v37 }
 0x1cc   : > { %1525 = shalt.err (!%p1522_p7)
}
 0x1cd   : > { %s1526_s28 = scalar_lea.hbm %s2522_s24, 2048  ;;  %s1530_s19 = scalar_lea.hbm %s2592_s3, 4096 }
 0x1ce   : > { %p1527_p9 = scmp.ne.s32.totalorder %s2522_s24, %s1526_s28  ;;  %p1531_p1 = scmp.lt.u32.totalorder %s2522_s24, %s2592_s3 }
 0x1cf   : > { %p1532_p8 = scmp.lt.u32.totalorder %s1530_s19, %s1526_s28  ;;  %p1534_p13 = scmp.lt.u32.totalorder %s1526_s28, %s2522_s24 }
 0x1d0   : > { %p1528_p2 = pnand %p1527_p9, %p2632_p12 }
 0x1d1   : > { %p1533_p4 = por %p1532_p8, %p1531_p1 }
 0x1d2   : > { %p1529_p6 = pneg %p1528_p2 }
 0x1d3   : > { %p1535_p0 = por %p1534_p13, %p1533_p4 }
 0x1d5   : > { %p1536_p5 = pnand %p1535_p0, %p1529_p6 }
 0x1d7   : > { %1539 = shalt.err (!%p1536_p5)
}
 0x1d8   : > { %s1614_s9 = smov 128   ;;  %s1615_s10 = smov 8  }
 0x1d9   : > { %1373 = dma.vmem_to_hbm [thread:$0]  (%p2632_p12), %s2524_s26, 2048, %s2522_s24, %s1119_s27, %s1614_s9, %s1614_s9, %s1615_s10  }
 0x1da PF: > { %s2633_s0 = sld [smem:[#allocation19_spill]]  ;;  %s2634_s11 = sld [smem:[#allocation18_spill]] }
 0x1db   : > { %s1149_s22 = sand.u32 1, %s1582_s12  }
 0x1dc   : > { %s1150_s21 = scalar_lea.sflag [#allocation5], %s1149_s22 }
 0x1e0   : > { %p2635_p10 = scmp.ne.s32.totalorder %s2633_s0, 0  ;;  %p2636_p11 = scmp.ge.s32.totalorder %s2634_s11, 2 }
 0x1e2   : > { %p1387_p3 = pnand %p2636_p11, %p2635_p10 }
 0x1e4   : > { %1577 = dma.done.wait (!%p1387_p3), %s1150_s21, 2048  }
 0x1e5   : > { %1579 = vsyncadd (!%p1387_p3), %s1150_s21, 4294965248  ;;  %s21_s17 = sadd.s32 1, %s2634_s11   ;;  %s2637_s12 = sld [smem:[#allocation15_spill]] }
 0x1e6   : > { %p18_p7 = scmp.ge.s32.totalorder %s21_s17, 4   ;;  %s2638_s13 = sld [smem:[#allocation16_spill]] }
 0x1e7   : > { %s2639_s14 = sld [smem:[#allocation21_spill]]  ;;  %s2640_s15 = sld [smem:[#allocation17_spill]] }
 0x1e8   : > { %s2641_s16 = sld [smem:[#allocation20_spill]]  ;;  %20 = sbr.rel (!%p18_p7) target bundleno = 12 (0xc), region = 102 }
 0x1ef   :  { %1155 = vsyncpa [#allocation4], 1 }
 0x1f0   :  { %1157 = vsyncpa [#allocation4 + $0x1], 1 }
 0x1f1   :  { %1158 = vsyncpa [#allocation5], 1 }
 0x1f2   :  { %1160 = vsyncpa [#allocation5 + $0x1], 1 }
 0x1f3   :  { %1161 = vsyncpa [#allocation6], 1 }
 0x1f4   :  { %1163 = vsyncpa [#allocation6 + $0x1], 1 }
 0x1f5   :  { %1164 = vsyncpa [#allocation7], 1 }
 0x1f6   :  { %1166 = vsyncpa [#allocation7 + $0x1], 1 }

</bundles_post_ra>
